<compile_context>
chip_gen: v7x
topology: tpu7x:2x2x1
jax: 0.10.0
libtpu: 0.0.40
codegen_flags: <defaults>
</compile_context>

<pallas_src>
import functools
import math

import jax
import jax.numpy as jnp
from jax.experimental import pallas as pl
from jax.experimental.pallas import tpu as pltpu


def _round_up(x, m):
    return (x + m - 1) // m * m


def _gelu(h, approximate):
    if approximate:
        # tanh GELU -> EUP (free VLIW slot); slightly different numerics than
        # torch nn.GELU(approximate='none').
        c = math.sqrt(2.0 / math.pi)
        return 0.5 * h * (1.0 + jnp.tanh(c * (h + 0.044715 * h * h * h)))
    # exact GELU (torch default)
    return 0.5 * h * (1.0 + jax.lax.erf(h * (1.0 / math.sqrt(2.0))))


# ---------------------------------------------------------------------------
# Kernels
# ---------------------------------------------------------------------------
def _ffn_kernel_resident(x_ref, w1_ref, b1_ref, w2_ref, b2_ref, o_ref,
                         *, approximate_gelu):
    """Full hidden dim in one shot: weights VMEM-resident, no accumulator."""
    x = x_ref[...]                                            # (TM, Cp) bf16
    h = jnp.dot(x, w1_ref[...], preferred_element_type=jnp.float32)
    h = _gelu(h + b1_ref[...], approximate_gelu)              # (TM, Chp) f32
    y = jnp.dot(h.astype(jnp.bfloat16), w2_ref[...],
                preferred_element_type=jnp.float32)           # (TM, Cp) f32
    # residual (shortcut) + folded-BN shift, direct write (no scratch)
    o_ref[...] = (y + b2_ref[...] + x.astype(jnp.float32)).astype(o_ref.dtype)


def _ffn_kernel_htiled(x_ref, w1_ref, b1_ref, w2_ref, b2_ref, o_ref, acc_ref,
                       *, approximate_gelu):
    """Hidden dim tiled (inner 'arbitrary' axis) with f32 VMEM accumulator."""
    h_idx = pl.program_id(1)
    x = x_ref[...]                                            # (TM, Cp) bf16
    h = jnp.dot(x, w1_ref[...], preferred_element_type=jnp.float32)
    h = _gelu(h + b1_ref[...], approximate_gelu)              # (TM, TH) f32
    partial = jnp.dot(h.astype(jnp.bfloat16), w2_ref[...],
                      preferred_element_type=jnp.float32)     # (TM, Cp) f32

    # Fused init+accumulate: first hidden tile writes residual + shift + partial.
    @pl.when(h_idx == 0)
    def _():
        acc_ref[...] = x.astype(jnp.float32) + b2_ref[...] + partial

    @pl.when(h_idx > 0)
    def _():
        acc_ref[...] += partial

    # drop_path = Identity (drop_path=0.0); write out on the last hidden tile.
    @pl.when(h_idx == pl.num_programs(1) - 1)
    def _():
        o_ref[...] = acc_ref[...].astype(o_ref.dtype)


# ---------------------------------------------------------------------------
# Tile selection / VMEM budgeting
# ---------------------------------------------------------------------------
@functools.lru_cache(maxsize=1)
def _vmem_budget_bytes():
    cap = 128 * 1024 * 1024
    try:
        info = pltpu.get_tpu_info()
        cap = int(getattr(info, "vmem_capacity_bytes", cap))
    except Exception:
        pass
    # Leave headroom for compiler-internal scratch/semaphores:
    # v7x (64 MiB) -> ~51 MiB;  v5e/v6e (128 MiB) -> ~102-107 MiB.
    return min(int(cap * 0.8), 112 * 1024 * 1024)


def _footprint_bytes(tile_m, tile_h, c_pad, out_itemsize, hidden_tiled):
    wbuf = 3 if hidden_tiled else 2                 # Buffered(3) when re-streamed
    w_bytes = wbuf * 2 * (2 * c_pad * tile_h)       # w1 + w2, bf16
    b_bytes = 2 * 4 * (tile_h + c_pad)
    x_bytes = 2 * tile_m * c_pad * 2                # bf16, double-buffered
    o_bytes = 2 * tile_m * c_pad * out_itemsize
    acc_bytes = tile_m * c_pad * 4 if hidden_tiled else 0
    tmp_bytes = 2 * tile_m * tile_h * 4 + tile_m * c_pad * 4   # GELU temps etc.
    return w_bytes + b_bytes + x_bytes + o_bytes + acc_bytes + tmp_bytes


def _select_tiles(M, c_pad, ch_pad, out_itemsize, budget, tile_m, tile_h):
    target = int(budget * 0.85)

    if tile_m is None:
        tile_m = 1024 if budget >= 96 * 1024 * 1024 else 512
    tile_m = _round_up(max(8, tile_m), 8)
    # Keep >= 2 M tiles when possible so the 'parallel' axis can populate both
    # TensorCores on v7x; for tiny M just cover it with one tile.
    if M >= 16:
        tile_m = min(tile_m, _round_up(-(-M // 2), 8))
    else:
        tile_m = min(tile_m, _round_up(M, 8))

    if tile_h is not None:
        tile_h = min(_round_up(max(128, tile_h), 128), ch_pad)
        return tile_m, tile_h

    # Prefer weights fully VMEM-resident (tile_h = full hidden); shrink tile_m
    # first, and only tile the hidden dim for genuinely huge hidden sizes.
    tile_h = ch_pad
    while (_footprint_bytes(tile_m, tile_h, c_pad, out_itemsize, False) > target
           and tile_m > 256):
        tile_m = max(256, _round_up(tile_m // 2, 8))
    while (_footprint_bytes(tile_m, tile_h, c_pad, out_itemsize,
                            tile_h < ch_pad) > target and tile_h > 1024):
        tile_h = max(1024, _round_up(tile_h // 2, 128))
    while (_footprint_bytes(tile_m, tile_h, c_pad, out_itemsize,
                            tile_h < ch_pad) > target and tile_m > 64):
        tile_m = max(64, _round_up(tile_m // 2, 8))
    return tile_m, tile_h


def _weight_spec(block_shape, index_map, multi_buffered):
    """BlockSpec for a re-streamed weight tile; deeper buffering hides its DMA."""
    if multi_buffered:
        try:
            return pl.BlockSpec(block_shape, index_map,
                                pipeline_mode=pl.Buffered(3))
        except TypeError:
            pass
    return pl.BlockSpec(block_shape, index_map)


# ---------------------------------------------------------------------------
# Wrappers
# ---------------------------------------------------------------------------
def ffn_2d(x2d, params, *, tile_m=None, tile_h=None, approximate_gelu=True,
           vmem_budget_bytes=None):
    """Fused FFN on a channels-last (M, C) slab.  Prefer this entry point and
    keep activations NHWC (and C a multiple of 128) model-wide so the per-call
    pad / transpose / slice around the kernel disappears entirely."""
    M, C = x2d.shape
    assert C == params["in_channel"]
    w1, b1 = params["w1"], params["shift1"]
    w2, b2 = params["w2"], params["shift2"]
    C_pad, Ch_pad = w1.shape
    assert w2.shape == (Ch_pad, C_pad)
    if w1.dtype != jnp.bfloat16:
        w1 = w1.astype(jnp.bfloat16)
    if w2.dtype != jnp.bfloat16:
        w2 = w2.astype(jnp.bfloat16)

    out_dtype = x2d.dtype
    out_itemsize = jnp.dtype(out_dtype).itemsize
    budget = int(vmem_budget_bytes or _vmem_budget_bytes())

    tile_m, tile_h = _select_tiles(M, C_pad, Ch_pad, out_itemsize, budget,
                                   tile_m, tile_h)

    # Hidden-dim padding only needed when a non-divisor tile_h was forced
    # (rare fallback; weights are normally pre-padded once in make_params).
    Ch_eff = _round_up(Ch_pad, tile_h)
    if Ch_eff != Ch_pad:
        w1 = jnp.pad(w1, ((0, 0), (0, Ch_eff - Ch_pad)))
        b1 = jnp.pad(b1, ((0, 0), (0, Ch_eff - Ch_pad)))
        w2 = jnp.pad(w2, ((0, Ch_eff - Ch_pad), (0, 0)))
    num_h = Ch_eff // tile_h

    M_pad = _round_up(M, tile_m)
    num_m = M_pad // tile_m

    # bf16 activations into the kernel (halves the x HBM stream); pad only if
    # the shape actually needs it.
    x_in = x2d.astype(jnp.bfloat16)
    needs_pad = (M_pad != M) or (C_pad != C)
    if needs_pad:
        x_in = jnp.pad(x_in, ((0, M_pad - M), (0, C_pad - C)))

    # Advisory cost estimate (reflects real weight re-stream when tiled).
    w_itemsize = jnp.dtype(w1.dtype).itemsize
    weight_stream = num_m if num_h > 1 else 1
    bytes_accessed = int(
        M_pad * C_pad * 2                                  # x in (bf16)
        + M_pad * C_pad * out_itemsize                     # out
        + weight_stream * (w1.size + w2.size) * w_itemsize
        + weight_stream * (b1.size + b2.size) * 4)
    cost = pl.CostEstimate(
        flops=int(4 * M_pad * C_pad * Ch_eff),
        transcendentals=int(M_pad * Ch_eff),
        bytes_accessed=bytes_accessed)

    if num_h == 1:
        kernel = functools.partial(_ffn_kernel_resident,
                                   approximate_gelu=approximate_gelu)
        grid = (num_m,)
        in_specs = [
            pl.BlockSpec((tile_m, C_pad), lambda i: (i, 0)),      # x tile
            pl.BlockSpec((C_pad, Ch_eff), lambda i: (0, 0)),      # w1 (resident)
            pl.BlockSpec((1, Ch_eff), lambda i: (0, 0)),          # shift1
            pl.BlockSpec((Ch_eff, C_pad), lambda i: (0, 0)),      # w2 (resident)
            pl.BlockSpec((1, C_pad), lambda i: (0, 0)),           # shift2
        ]
        out_specs = pl.BlockSpec((tile_m, C_pad), lambda i: (i, 0))
        scratch_shapes = []
        dim_sem = ("parallel",)
    else:
        kernel = functools.partial(_ffn_kernel_htiled,
                                   approximate_gelu=approximate_gelu)
        grid = (num_m, num_h)
        in_specs = [
            pl.BlockSpec((tile_m, C_pad), lambda i, h: (i, 0)),
            _weight_spec((C_pad, tile_h), lambda i, h: (0, h), True),
            pl.BlockSpec((1, tile_h), lambda i, h: (0, h)),
            _weight_spec((tile_h, C_pad), lambda i, h: (h, 0), True),
            pl.BlockSpec((1, C_pad), lambda i, h: (0, 0)),
        ]
        out_specs = pl.BlockSpec((tile_m, C_pad), lambda i, h: (i, 0))
        scratch_shapes = [pltpu.VMEM((tile_m, C_pad), jnp.float32)]
        dim_sem = ("parallel", "arbitrary")

    out_p = pl.pallas_call(
        kernel,
        out_shape=jax.ShapeDtypeStruct((M_pad, C_pad), out_dtype),
        grid_spec=pltpu.PrefetchScalarGridSpec(
            num_scalar_prefetch=0,
            grid=grid,
            in_specs=in_specs,
            out_specs=out_specs,
            scratch_shapes=scratch_shapes),
        compiler_params=pltpu.CompilerParams(
            dimension_semantics=dim_sem,
            vmem_limit_bytes=budget),
        cost_estimate=cost,
    )(x_in, w1, b1, w2, b2)

    if needs_pad:
        out_p = out_p[:M, :C]
    return out_p


def ffn_module(x_nchw, params, *, tile_m=None, tile_h=None,
               approximate_gelu=True):
    """FFNModule forward: fc1(conv1x1+BN+GELU) -> fc2(conv1x1+BN) -> +shortcut.
    NCHW wrapper; for chained layers prefer ffn_2d on NHWC slabs to avoid the
    surrounding transposes."""
    B, C, H, W = x_nchw.shape
    M = B * H * W
    x2d = jnp.transpose(x_nchw, (0, 2, 3, 1)).reshape(M, C)
    out2d = ffn_2d(x2d, params, tile_m=tile_m, tile_h=tile_h,
                   approximate_gelu=approximate_gelu)
    return jnp.transpose(out2d.reshape(B, H, W, C), (0, 3, 1, 2))


# ---------------------------------------------------------------------------
# Params (BN folded, pre-padded once) and pure-JAX references
# ---------------------------------------------------------------------------
def make_params(key, in_channel, hidden_channel, *, weight_dtype=jnp.bfloat16):
    """Deterministic synthetic params.  BN (eval mode) + conv bias folded:
    scale s = gamma / sqrt(var + eps) goes into the weight columns,
    shift = (b - mean) * s + beta stays as a per-output-channel add.
    Weights/shifts are padded to 128-lane multiples HERE (one-time cost)."""
    # TODO(synk): training-mode BatchNorm (batch stats) and DropPath > 0
    # (stochastic depth) are not implemented; this is the inference path.
    eps = 1e-5
    ks = jax.random.split(key, 12)

    def fold(w_oi, b, gamma, beta, mean, var):
        s = gamma / jnp.sqrt(var + eps)
        w_folded = (w_oi * s[:, None]).T                 # (Cin, Cout)
        shift = ((b - mean) * s + beta)[None, :]         # (1, Cout)
        return w_folded, shift

    w1 = jax.random.normal(ks[0], (hidden_channel, in_channel)) * 0.1
    b1 = jax.random.normal(ks[1], (hidden_channel,)) * 0.05
    g1 = 1.0 + 0.1 * jax.random.normal(ks[2], (hidden_channel,))
    beta1 = 0.05 * jax.random.normal(ks[3], (hidden_channel,))
    m1 = 0.05 * jax.random.normal(ks[4], (hidden_channel,))
    v1 = 1.0 + 0.1 * jnp.abs(jax.random.normal(ks[5], (hidden_channel,)))
    w1_f, shift1 = fold(w1, b1, g1, beta1, m1, v1)

    w2 = jax.random.normal(ks[6], (in_channel, hidden_channel)) * 0.1
    b2 = jax.random.normal(ks[7], (in_channel,)) * 0.05
    g2 = 1.0 + 0.1 * jax.random.normal(ks[8], (in_channel,))
    beta2 = 0.05 * jax.random.normal(ks[9], (in_channel,))
    m2 = 0.05 * jax.random.normal(ks[10], (in_channel,))
    v2 = 1.0 + 0.1 * jnp.abs(jax.random.normal(ks[11], (in_channel,)))
    w2_f, shift2 = fold(w2, b2, g2, beta2, m2, v2)

    C_pad = _round_up(in_channel, 128)
    Ch_pad = _round_up(hidden_channel, 128)
    dc, dh = C_pad - in_channel, Ch_pad - hidden_channel
    return {
        "w1": jnp.pad(w1_f, ((0, dc), (0, dh))).astype(weight_dtype),
        "shift1": jnp.pad(shift1, ((0, 0), (0, dh))).astype(jnp.float32),
        "w2": jnp.pad(w2_f, ((0, dh), (0, dc))).astype(weight_dtype),
        "shift2": jnp.pad(shift2, ((0, 0), (0, dc))).astype(jnp.float32),
        "in_channel": in_channel,
        "hidden_channel": hidden_channel,
    }


def ffn_reference_f32(x_nchw, params):
    """Pure-JAX reference: fp32 matmuls, exact-erf GELU (torch semantics)."""
    B, C, H, W = x_nchw.shape
    C_pad = params["w1"].shape[0]
    x2d = jnp.transpose(x_nchw, (0, 2, 3, 1)).reshape(-1, C).astype(jnp.float32)
    x2d = jnp.pad(x2d, ((0, 0), (0, C_pad - C)))
    w1 = params["w1"].astype(jnp.float32)
    w2 = params["w2"].astype(jnp.float32)
    h = x2d @ w1 + params["shift1"]
    h = _gelu(h, approximate=False)
    y = h @ w2 + params["shift2"] + x2d
    y = y[:, :C]
    return jnp.transpose(y.reshape(B, H, W, C), (0, 3, 1, 2)).astype(x_nchw.dtype)


def ffn_reference_bf16(x_nchw, params, *, approximate_gelu=True):
    """Pure-JAX reference mirroring the kernel (bf16 operands, same GELU)."""
    B, C, H, W = x_nchw.shape
    C_pad = params["w1"].shape[0]
    x2d = jnp.transpose(x_nchw, (0, 2, 3, 1)).reshape(-1, C)
    xb = jnp.pad(x2d.astype(jnp.bfloat16), ((0, 0), (0, C_pad - C)))
    h = jnp.dot(xb, params["w1"],
                preferred_element_type=jnp.float32) + params["shift1"]
    h = _gelu(h, approximate_gelu)
    y = jnp.dot(h.astype(jnp.bfloat16), params["w2"],
                preferred_element_type=jnp.float32)
    y = y + params["shift2"] + xb.astype(jnp.float32)
    y = y[:, :C]
    return jnp.transpose(y.reshape(B, H, W, C), (0, 3, 1, 2)).astype(x_nchw.dtype)


if __name__ == "__main__":
    key = jax.random.PRNGKey(0)
    kx, kp, kp2 = jax.random.split(key, 3)

    B, C, H, W = 2, 4, 16, 16
    hidden = 32
    x = jax.random.normal(kx, (B, C, H, W), dtype=jnp.float32)
    params = make_params(kp, C, hidden)

    # Path 1 (default): weights fully VMEM-resident (num_h == 1), auto tile_m
    # gives >= 2 M tiles along the parallel axis.
    out = ffn_module(x, params)
    out = jax.block_until_ready(out)
    assert out.shape == (B, C, H, W)

    ref_bf16 = ffn_reference_bf16(x, params)
    assert jnp.allclose(out, ref_bf16, atol=1e-3, rtol=1e-3), (
        "max abs diff vs bf16 ref: "
        + str(float(jnp.max(jnp.abs(out - ref_bf16)))))

    ref_f32 = ffn_reference_f32(x, params)
    assert jnp.allclose(out, ref_f32, atol=3e-2, rtol=3e-2), (
        "max abs diff vs f32 ref: "
        + str(float(jnp.max(jnp.abs(out - ref_f32)))))

    # Path 2: forced hidden tiling (exercises the accumulator + buffered
    # weight-stream fallback used for very large hidden dims).
    hidden2 = 256
    params2 = make_params(kp2, C, hidden2)
    out2 = ffn_module(x, params2, tile_m=256, tile_h=128)
    out2 = jax.block_until_ready(out2)
    ref2 = ffn_reference_bf16(x, params2)
    assert jnp.allclose(out2, ref2, atol=2e-3, rtol=2e-3), (
        "max abs diff (tiled path): "
        + str(float(jnp.max(jnp.abs(out2 - ref2)))))

    print("KERNEL_OK")
</pallas_src>

<mosaic_0001>
module attributes {stable_mosaic.version = 11 : i64} {
  func.func @_ffn_kernel_resident(%arg0: i32, %arg1: memref<256x128xbf16, #tpu.memory_space<vmem>>, %arg2: memref<128x128xbf16, #tpu.memory_space<vmem>>, %arg3: memref<1x128xf32, #tpu.memory_space<vmem>>, %arg4: memref<128x128xbf16, #tpu.memory_space<vmem>>, %arg5: memref<1x128xf32, #tpu.memory_space<vmem>>, %arg6: memref<256x128xf32, #tpu.memory_space<vmem>>) attributes {dimension_semantics = [#tpu.dimension_semantics<parallel>], iteration_bounds = array<i64: 2>, scalar_prefetch = 0 : i64, scratch_operands = 0 : i64, tpu.core_type = #tpu.core_type<tc>, window_params = [{transform_indices = @transform_0, window_bounds = array<i64: 256, 128>}, {pipeline_mode = #tpu.pipeline_mode<synchronous>, transform_indices = @transform_1, window_bounds = array<i64: 128, 128>}, {pipeline_mode = #tpu.pipeline_mode<synchronous>, transform_indices = @transform_2, window_bounds = array<i64: 1, 128>}, {pipeline_mode = #tpu.pipeline_mode<synchronous>, transform_indices = @transform_3, window_bounds = array<i64: 128, 128>}, {pipeline_mode = #tpu.pipeline_mode<synchronous>, transform_indices = @transform_4, window_bounds = array<i64: 1, 128>}, {transform_indices = @transform_5, window_bounds = array<i64: 256, 128>}]} {
    %c0 = arith.constant 0 : index
    %c0_0 = arith.constant 0 : index
    %0 = vector.load %arg1[%c0, %c0_0] : memref<256x128xbf16, #tpu.memory_space<vmem>>, vector<256x128xbf16>
    %c0_1 = arith.constant 0 : index
    %c0_2 = arith.constant 0 : index
    %1 = vector.load %arg2[%c0_1, %c0_2] : memref<128x128xbf16, #tpu.memory_space<vmem>>, vector<128x128xbf16>
    %cst = arith.constant dense<0.000000e+00> : vector<256x128xf32>
    %2 = tpu.matmul %0, %1, %cst {dimension_numbers = #tpu.dot_dimension_numbers<[1], [0], [0], [1], [0, 0, 1, 1], [], []>} : vector<256x128xbf16>, vector<128x128xbf16>, vector<256x128xf32> -> vector<256x128xf32>
    %c0_3 = arith.constant 0 : index
    %c0_4 = arith.constant 0 : index
    %3 = vector.load %arg3[%c0_3, %c0_4] : memref<1x128xf32, #tpu.memory_space<vmem>>, vector<1x128xf32>
    %4 = vector.broadcast %3 : vector<1x128xf32> to vector<256x128xf32>
    %5 = arith.addf %2, %4 : vector<256x128xf32>
    %cst_5 = arith.constant 5.000000e-01 : f32
    %6 = vector.broadcast %cst_5 : f32 to vector<256x128xf32>
    %7 = arith.mulf %6, %5 : vector<256x128xf32>
    %cst_6 = arith.constant 4.471500e-02 : f32
    %8 = vector.broadcast %cst_6 : f32 to vector<256x128xf32>
    %9 = arith.mulf %8, %5 : vector<256x128xf32>
    %10 = arith.mulf %9, %5 : vector<256x128xf32>
    %11 = arith.mulf %10, %5 : vector<256x128xf32>
    %12 = arith.addf %5, %11 : vector<256x128xf32>
    %cst_7 = arith.constant 0.797884583 : f32
    %13 = vector.broadcast %cst_7 : f32 to vector<256x128xf32>
    %14 = arith.mulf %13, %12 : vector<256x128xf32>
    %15 = math.tanh %14 : vector<256x128xf32>
    %cst_8 = arith.constant 1.000000e+00 : f32
    %16 = vector.broadcast %cst_8 : f32 to vector<256x128xf32>
    %17 = arith.addf %16, %15 : vector<256x128xf32>
    %18 = arith.mulf %7, %17 : vector<256x128xf32>
    %19 = arith.truncf %18 : vector<256x128xf32> to vector<256x128xbf16>
    %c0_9 = arith.constant 0 : index
    %c0_10 = arith.constant 0 : index
    %20 = vector.load %arg4[%c0_9, %c0_10] : memref<128x128xbf16, #tpu.memory_space<vmem>>, vector<128x128xbf16>
    %cst_11 = arith.constant dense<0.000000e+00> : vector<256x128xf32>
    %21 = tpu.matmul %19, %20, %cst_11 {dimension_numbers = #tpu.dot_dimension_numbers<[1], [0], [0], [1], [0, 0, 1, 1], [], []>} : vector<256x128xbf16>, vector<128x128xbf16>, vector<256x128xf32> -> vector<256x128xf32>
    %c0_12 = arith.constant 0 : index
    %c0_13 = arith.constant 0 : index
    %22 = vector.load %arg5[%c0_12, %c0_13] : memref<1x128xf32, #tpu.memory_space<vmem>>, vector<1x128xf32>
    %23 = vector.broadcast %22 : vector<1x128xf32> to vector<256x128xf32>
    %24 = arith.addf %21, %23 : vector<256x128xf32>
    %25 = arith.extf %0 : vector<256x128xbf16> to vector<256x128xf32>
    %26 = arith.addf %24, %25 : vector<256x128xf32>
    %c0_14 = arith.constant 0 : index
    %c0_15 = arith.constant 0 : index
    %27 = vector.load %arg6[%c0_14, %c0_15] : memref<256x128xf32, #tpu.memory_space<vmem>>, vector<256x128xf32>
    tpu.vector_store %arg6[%c0_14, %c0_15], %26 {strides = array<i32>} : memref<256x128xf32, #tpu.memory_space<vmem>>, vector<256x128xf32>,
    return
  }
  func.func @transform_0(%arg0: i32) -> (i32, i32) {
    %c0_i32 = arith.constant 0 : i32
    %c0_i32_0 = arith.constant 0 : i32
    return %arg0, %c0_i32 : i32, i32
  }
  func.func @transform_1(%arg0: i32) -> (i32, i32) {
    %c0_i32 = arith.constant 0 : i32
    %c0_i32_0 = arith.constant 0 : i32
    %c0_i32_1 = arith.constant 0 : i32
    return %c0_i32, %c0_i32_0 : i32, i32
  }
  func.func @transform_2(%arg0: i32) -> (i32, i32) {
    %c0_i32 = arith.constant 0 : i32
    %c0_i32_0 = arith.constant 0 : i32
    %c0_i32_1 = arith.constant 0 : i32
    return %c0_i32, %c0_i32_0 : i32, i32
  }
  func.func @transform_3(%arg0: i32) -> (i32, i32) {
    %c0_i32 = arith.constant 0 : i32
    %c0_i32_0 = arith.constant 0 : i32
    %c0_i32_1 = arith.constant 0 : i32
    return %c0_i32, %c0_i32_0 : i32, i32
  }
  func.func @transform_4(%arg0: i32) -> (i32, i32) {
    %c0_i32 = arith.constant 0 : i32
    %c0_i32_0 = arith.constant 0 : i32
    %c0_i32_1 = arith.constant 0 : i32
    return %c0_i32, %c0_i32_0 : i32, i32
  }
  func.func @transform_5(%arg0: i32) -> (i32, i32) {
    %c0_i32 = arith.constant 0 : i32
    %c0_i32_0 = arith.constant 0 : i32
    return %arg0, %c0_i32 : i32, i32
  }
}

</mosaic_0001>

<bundles_post_ra>
// kernel: tpu_custom_call.1
= control target key start
LH: loop header
LB: loop body
LE: loop exit
PB: predicated region body
PF: predicated region fallthrough
CT: control target
= control target key end

     0   :  { %10 = vsyncpa [#allocation3], 0  ;;  %s2757_s0 = inlined_call_operand.hbm [shape: bf16[512,128], index: 0, kind: input, shape index: {}]   ;;  %s2758_s1 = inlined_call_operand.hbm [shape: bf16[128,128], index: 1, kind: input, shape index: {}]   ;;  %s2759_s2 = inlined_call_operand.hbm [shape: f32[1,128], index: 2, kind: input, shape index: {}]   ;;  %s2760_s3 = inlined_call_operand.hbm [shape: bf16[128,128], index: 3, kind: input, shape index: {}]   ;;  %s2761_s4 = inlined_call_operand.hbm [shape: f32[1,128], index: 4, kind: input, shape index: {}]   ;;  %s2762_s5 = inlined_call_operand.hbm [shape: f32[512,128], index: 5, kind: output, shape index: {}]  }
   0x1   :  { %12 = vsyncpa [#allocation3 + $0x1], 0 }
   0x2   :  { %13 = vsyncpa [#allocation6], 0 }
   0x3   :  { %14 = vsyncpa [#allocation9], 0 }
   0x4   :  { %15 = vsyncpa [#allocation4], 0 }
   0x5   :  { %17 = vsyncpa [#allocation4 + $0x1], 0  ;;  %s2094_s18 = smov 0   ;;  %s2096_s19 = smov 0  }
   0x6   :  { %s2098_s20 = smov 0   ;;  %s2100_s21 = smov 0  }
   0x7 LB: > { %s2115_s22 = sadd.s32 4294967295, %s2052_s21   ;;  %s1417_s23 = sadd.s32 4294967294, %s2052_s21   ;;  %s2052_s21 = sphi %s2100_s21, %s2785_s21   ;;  %s2048_s20 = sphi %s2098_s20, %s2784_s20   ;;  %s2044_s19 = sphi %s2096_s19, %s2783_s19   ;;  %s2040_s18 = sphi %s2094_s18, %s2782_s18  }
   0x8   : > { %p43_p0 = scmp.ne.s32.totalorder %s2044_s19, %s2040_s18  ;;  %p2763_p1 = scmp.eq.s32.totalorder %s2115_s22, 0 }
   0x9   : > { %p157_p3 = scmp.eq.s32.totalorder %s1417_s23, 1  ;;  %p1418_p5 = scmp.ge.s32.totalorder %s2052_s21, 1 }
   0xa   : > { %p2124_p4 = por %p2763_p1, %p43_p0  ;;  %p164_p7 = scmp.lt.s32.totalorder %s2052_s21, 3 }
   0xb   : > { %p2129_p6 = por %p157_p3, %p43_p0  ;;  %s2054_s27 = smov [#allocation5]  }
   0xc   : > { %s2766_s24 = scalar_select %p2124_p4, 1, 0 }
   0xd   : > { %s2767_s25 = scalar_select %p2129_p6, 1, 0 }
   0xe   : > { %p2134_p8 = pnand %p1418_p5, %p164_p7  ;;  %s176_s28 = sshll.u32 %s2054_s27, 4  ;;  %s2138_s28 = int_to_ptr.vmem [resolvable:$true] %s176_s28 }
   0xf   : > { %s2055_s30 = smov [#allocation8]   ;;  %s2056_s7 = smov [#allocation7]  }
  0x10   : > { %s2768_s26 = scalar_select %p2134_p8, 1, 0 }
  0x11   : > { %p1639_p9 = pneg %p2134_p8  ;;  %s200_s6 = sshll.u32 %s2055_s30, 4  ;;  %s2149_s6 = int_to_ptr.vmem [resolvable:$true] %s200_s6 }
  0x12   : > { %s2151_s8 = sshll.u32 %s2056_s7, 4  ;;  %s1836_s11 = scalar_lea.hbm %s2758_s1, 1024  ;;  %s191_s8 = int_to_ptr.vmem [resolvable:$true] %s2151_s8 }
  0x13   : > { %p2145_p11 = pnand %p1639_p9, %p2763_p1  ;;  %p1837_p12 = scmp.ne.s32.totalorder %s2758_s1, %s1836_s11 }
  0x14   : > { %p1843_p5 = scmp.lt.u32.totalorder %s1836_s11, %s2758_s1 }
  0x15   : > { %p2161_p13 = pneg %p2145_p11 }
  0x17   : > { %p1839_p0 = pnand %p2161_p13, %p1837_p12 }
  0x19   : > { %p1840_p3 = pneg %p1839_p0 }
  0x1b   : > { %p1845_p7 = pnand %p1843_p5, %p1840_p3 }
  0x1d   : > { %1848 = shalt.err (!%p1845_p7)
}
  0x1e   : > { %s1849_s17 = scalar_lea.vmem %s2138_s28, 1024  ;;  %p1857_p2 = scmp.lt.s32.totalorder %s2138_s28, %s2138_s28 }
  0x1f   : > { %p1850_p9 = scmp.ne.s32.totalorder %s2138_s28, %s1849_s17  ;;  %p1858_p6 = scmp.lt.s32.totalorder %s1849_s17, %s1849_s17 }
  0x21   : > { %p1852_p10 = pnand %p1850_p9, %p2161_p13  ;;  %p1859_p12 = por %p1858_p6, %p1857_p2 }
  0x23   : > { %p1853_p1 = pneg %p1852_p10 }
  0x25   : > { %p1860_p0 = pnand %p1859_p12, %p1853_p1 }
  0x27   : > { %1863 = shalt.err (!%p1860_p0)
}
  0x28   : > { %s2057_s23 = smov 64   ;;  %s2058_s27 = smov 4  }
  0x29   : > { %1642 = dma.hbm_to_vmem [thread:$0]  (!%p2145_p11), %s2758_s1, 1024, %s2138_s28, [#allocation6], %s2057_s23, %s2057_s23, %s2058_s27  }
  0x2a   : > { %s1864_s11 = scalar_lea.hbm %s2760_s3, 1024 }
  0x2b   : > { %p1865_p1 = scmp.ne.s32.totalorder %s2760_s3, %s1864_s11  ;;  %p1871_p10 = scmp.lt.u32.totalorder %s1864_s11, %s2760_s3 }
  0x2d   : > { %p1867_p2 = pnand %p1865_p1, %p2161_p13 }
  0x2f   : > { %p1868_p6 = pneg %p1867_p2 }
  0x31   : > { %p1873_p3 = pnand %p1871_p10, %p1868_p6 }
  0x33   : > { %1876 = shalt.err (!%p1873_p3)
}
  0x34   : > { %s1877_s28 = scalar_lea.vmem %s2149_s6, 1024  ;;  %p1885_p12 = scmp.lt.s32.totalorder %s2149_s6, %s2149_s6 }
  0x35   : > { %p1878_p5 = scmp.ne.s32.totalorder %s2149_s6, %s1877_s28  ;;  %p1886_p0 = scmp.lt.s32.totalorder %s1877_s28, %s1877_s28 }
  0x37   : > { %p1880_p7 = pnand %p1878_p5, %p2161_p13  ;;  %p1887_p1 = por %p1886_p0, %p1885_p12 }
  0x39   : > { %p1881_p9 = pneg %p1880_p7 }
  0x3b   : > { %p1888_p2 = pnand %p1887_p1, %p1881_p9 }
  0x3d   : > { %1891 = shalt.err (!%p1888_p2)
}
  0x3e   : > { %1648 = dma.hbm_to_vmem [thread:$0]  (!%p2145_p11), %s2760_s3, 1024, %s2149_s6, [#allocation9], %s2057_s23, %s2057_s23, %s2058_s27  }
  0x3f   : > { %s1892_s10 = scalar_lea.hbm %s2759_s2, 16 }
  0x40   : > { %p1893_p6 = scmp.ne.s32.totalorder %s2759_s2, %s1892_s10  ;;  %p1899_p5 = scmp.lt.u32.totalorder %s1892_s10, %s2759_s2 }
  0x42   : > { %p1895_p10 = pnand %p1893_p6, %p2161_p13 }
  0x44   : > { %p1896_p3 = pneg %p1895_p10 }
  0x46   : > { %p1901_p7 = pnand %p1899_p5, %p1896_p3 }
  0x48   : > { %1904 = shalt.err (!%p1901_p7)
}
  0x49   : > { %s1905_s16 = scalar_lea.vmem %s191_s8, 16  ;;  %s1912_s6 = scalar_lea.vmem %s191_s8, 32 }
  0x4a   : > { %p1906_p9 = scmp.ne.s32.totalorder %s191_s8, %s1905_s16  ;;  %p1913_p1 = scmp.lt.s32.totalorder %s191_s8, %s191_s8 }
  0x4b   : > { %p1914_p2 = scmp.lt.s32.totalorder %s1912_s6, %s1905_s16 }
  0x4c   : > { %p1908_p12 = pnand %p1906_p9, %p2161_p13 }
  0x4d   : > { %p1915_p4 = por %p1914_p2, %p1913_p1 }
  0x4e   : > { %p1909_p0 = pneg %p1908_p12 }
  0x50   : > { %p1916_p8 = pnand %p1915_p4, %p1909_p0 }
  0x52   : > { %1919 = shalt.err (!%p1916_p8)
}
  0x53   : > { %1645 = dma.hbm_to_vmem [thread:$0]  (!%p2145_p11), %s2759_s2, 16, %s191_s8, [#allocation6]  }
  0x54   : > { %s2059_s30 = smov [#allocation10]   ;;  %s1920_s11 = scalar_lea.hbm %s2761_s4, 16 }
  0x55   : > { %s214_s7 = sshll.u32 %s2059_s30, 4  ;;  %p1921_p6 = scmp.ne.s32.totalorder %s2761_s4, %s1920_s11  ;;  %s215_s7 = int_to_ptr.vmem [resolvable:$true] %s214_s7 }
  0x56   : > { %p1927_p10 = scmp.lt.u32.totalorder %s1920_s11, %s2761_s4 }
  0x57   : > { %p1923_p4 = pnand %p1921_p6, %p2161_p13 }
  0x59   : > { %p1924_p8 = pneg %p1923_p4 }
  0x5b   : > { %p1929_p3 = pnand %p1927_p10, %p1924_p8 }
  0x5d   : > { %1932 = shalt.err (!%p1929_p3)
}
  0x5e   : > { %s1933_s8 = scalar_lea.vmem %s215_s7, 16  ;;  %s1940_s6 = scalar_lea.vmem %s215_s7, 32 }
  0x5f   : > { %p1934_p5 = scmp.ne.s32.totalorder %s215_s7, %s1933_s8  ;;  %p1941_p12 = scmp.lt.s32.totalorder %s215_s7, %s215_s7 }
  0x60   : > { %p1942_p0 = scmp.lt.s32.totalorder %s1940_s6, %s1933_s8 }
  0x61   : > { %p1936_p7 = pnand %p1934_p5, %p2161_p13 }
  0x62   : > { %p1943_p1 = por %p1942_p0, %p1941_p12 }
  0x63   : > { %p1937_p9 = pneg %p1936_p7 }
  0x65   : > { %p1944_p2 = pnand %p1943_p1, %p1937_p9 }
  0x67   : > { %1947 = shalt.err (!%p1944_p2)
}
  0x68   : > { %1651 = dma.hbm_to_vmem [thread:$0]  (!%p2145_p11), %s2761_s4, 16, %s215_s7, [#allocation9]  }
  0x69   : > { %s2249_s14 = sadd.s32 1, %s2052_s21   ;;  %s30_s30 = sadd.s32 1, %s2048_s20 }
  0x6a   : > { %s27_s29 = ssub.s32 %s2052_s21, %s2249_s14  ;;  %p37_p13 = scmp.ne.s32.totalorder %s2048_s20, %s2044_s19 }
  0x6b   : > { %p28_p6 = scmp.eq.s32.totalorder %s27_s29, 0  ;;  %p38_p4 = scmp.eq.s32.totalorder %s2052_s21, 0 }
  0x6c   : > { %p2771_p8 = scmp.eq.s32.totalorder %s2115_s22, 1  ;;  %p1664_p3 = scmp.lt.s32.totalorder %s2052_s21, 2 }
  0x6d   : > { %s2265_s10 = scalar_select %p28_p6, %s2048_s20, %s30_s30  }
  0x6e   : > { %p2259_p10 = por %p2771_p8, %p37_p13  ;;  %p39_p5 = por %p38_p4, %p37_p13 }
  0x6f   : > { %s225_s11 = sand.u32 1, %s2048_s20   ;;  %s1473_s7 = sshll.u32 %s2052_s21, 11 }
  0x70   : > { %s1424_s12 = sshll.u32 %s225_s11, 7  ;;  %s2272_s16 = scalar_lea.hbm %s2757_s0, %s1473_s7 }
  0x71   : > { %s229_s8 = scalar_lea.vmem [#allocation2], %s1424_s12  ;;  %p2276_p11 = pnand %p1664_p3, %p39_p5 }
  0x72   : > { %s236_s6 = sshll.u32 %s229_s8, 4  ;;  %s2280_s17 = scalar_lea.sflag [#allocation3], %s225_s11  ;;  %s2274_s6 = int_to_ptr.vmem [resolvable:$true] %s236_s6 }
  0x73   : > { %s1948_s30 = scalar_lea.hbm %s2272_s16, 2048  ;;  %p1950_p9 = pneg %p2276_p11 }
  0x74   : > { %p1949_p7 = scmp.ne.s32.totalorder %s2272_s16, %s1948_s30  ;;  %s1953_s7 = scalar_lea.hbm %s2757_s0, 4096 }
  0x75   : > { %p1954_p1 = scmp.lt.u32.totalorder %s2272_s16, %s2757_s0  ;;  %p1955_p2 = scmp.lt.u32.totalorder %s1953_s7, %s1948_s30 }
  0x76   : > { %p1951_p12 = pnand %p1950_p9, %p1949_p7  ;;  %p1957_p6 = scmp.lt.u32.totalorder %s1948_s30, %s2272_s16 }
  0x77   : > { %p1956_p13 = por %p1955_p2, %p1954_p1 }
  0x78   : > { %p1952_p0 = pneg %p1951_p12 }
  0x79   : > { %p1958_p4 = por %p1957_p6, %p1956_p13 }
  0x7b   : > { %p1959_p8 = pnand %p1958_p4, %p1952_p0 }
  0x7d   : > { %1962 = shalt.err (!%p1959_p8)
}
  0x7e   : > { %s1963_s11 = scalar_lea.vmem %s2274_s6, 2048  ;;  %s2060_s8 = smov [#allocation2]  }
  0x7f   : > { %p1964_p3 = scmp.ne.s32.totalorder %s2274_s6, %s1963_s11  ;;  %s1968_s29 = sshll.u32 %s2060_s8, 4  ;;  %s1969_s29 = int_to_ptr.vmem [resolvable:$false] %s1968_s29 }
  0x80   : > { %s1970_s12 = scalar_lea.vmem %s1969_s29, 4096  ;;  %p1971_p12 = scmp.lt.s32.totalorder %s2274_s6, %s1969_s29 }
  0x81   : > { %p1966_p5 = pnand %p1964_p3, %p1950_p9  ;;  %p1972_p1 = scmp.lt.s32.totalorder %s1970_s12, %s1963_s11 }
  0x83   : > { %p1967_p7 = pneg %p1966_p5  ;;  %p1973_p2 = por %p1972_p1, %p1971_p12 }
  0x85   : > { %p1974_p13 = pnand %p1973_p2, %p1967_p7 }
  0x87   : > { %1977 = shalt.err (!%p1974_p13)
}
  0x88   : > { %1655 = dma.hbm_to_vmem [thread:$0]  (!%p2276_p11), %s2272_s16, 2048, %s2274_s6, %s2280_s17, %s2057_s23, %s2057_s23, %s2058_s27  }
  0x89   : > { %p2774_p9 = scmp.ne.s32.totalorder %s2768_s26, 0 }
  0x8a   : > { %s2314_s30 = sand.u32 (!%p2774_p9), 1, %s2044_s19   ;;  %p2775_p0 = scmp.ne.s32.totalorder (!%p2774_p9), %s2766_s24, 0 }
  0x8b   : > { %248 = sbr.rel (%p2774_p9) target bundleno = 738 (0x2e2), region = 40  ;;  %s1428_s7 = sshll.u32 (!%p2774_p9), %s2314_s30, 7 }
  0x8c   : > { %s251_s13 = scalar_lea.sflag (!%p2774_p9), [#allocation3], %s2314_s30  ;;  %s2318_s15 = scalar_lea.vmem (!%p2774_p9), [#allocation2], %s1428_s7 }
  0x92   : > { %2023 = dma.done.wait (%p2775_p0), %s251_s13, 2048  }
  0x93   : > { %2025 = vsyncadd (%p2775_p0), %s251_s13, 4294965248  ;;  %p2776_p11 = scmp.eq.s32.totalorder %s2115_s22, 0 }
  0x95   : > { %2027 = dma.done.wait (%p2776_p11), [#allocation6], 1040   ;;  %p2777_p6 = pmov %p2776_p11 }
  0x97   : > { %2029 = vsyncadd (%p2777_p6), [#allocation6], 4294966256  ;;  %p2778_p4 = pmov %p2777_p6 }
  0x99   : > { %2031 = dma.done.wait (%p2778_p4), [#allocation9], 1040   ;;  %p2779_p8 = pmov %p2778_p4 }
  0x9a   : > { %v1710_v0 = vld [vmem:[#allocation5] sm:$0xff]   ;;  %v1711_v1 = vld [vmem:[#allocation5 + $0x8] sm:$0xff]   ;;  %v1712_v2 = vld [vmem:[#allocation5 + $0x10] sm:$0xff]   ;;  %s1433_s24 = sshll.u32 %s2314_s30, 8  ;;  %s1474_s23 = sshll.u32 %s2115_s22, 12 }
  0x9b   : > { %2033 = vsyncadd (%p2779_p8), [#allocation9], 4294966256  ;;  %1523 = vmatprep.subr.bf16.mxu0 %v1710_v0  ;;  %v1713_v3 = vld [vmem:[#allocation5 + $0x18] sm:$0xff]   ;;  %v300_v4 = vld [vmem:[%s2318_s15] sm:$0xff]   ;;  %s2628_s26 = scalar_lea.vmem [#allocation11], %s1433_s24  ;;  %s2708_s28 = scalar_lea.hbm %s2762_s5, %s1474_s23 }
  0x9c   : > { %1524 = vmatpush3.bf16.msra.mxu0 %v1710_v0  ;;  %1539 = vmatprep.mubr.bf16.mxu0 %v300_v4  ;;  %v1714_v5 = vld [vmem:[#allocation5 + $0x20] sm:$0xff]   ;;  %v1715_v6 = vld [vmem:[#allocation5 + $0x28] sm:$0xff]   ;;  %v1716_v7 = vld [vmem:[#allocation5 + $0x30] sm:$0xff]   ;;  %s1306_s27 = sshll.u32 %s2628_s26, 4  ;;  %s1293_s22 = scalar_lea.sflag [#allocation4], %s2314_s30  ;;  %s2710_s27 = int_to_ptr.vmem [resolvable:$true] %s1306_s27 }
  0x9d   : > { %1525 = vmatprep.subr.bf16.mxu0 %v1711_v1  ;;  %v1717_v8 = vld [vmem:[#allocation5 + $0x38] sm:$0xff]   ;;  %v2334_v9 = vld [vmem:[%s2318_s15 + $0x8] sm:$0xff]   ;;  %v2337_v10 = vld [vmem:[%s2318_s15 + $0x10] sm:$0xff]   ;;  %s1978_s17 = scalar_lea.vmem %s2710_s27, 4096  ;;  %s2061_s11 = smov [#allocation11]  }
  0x9e   : > { %v2342_v11 = vld [vmem:[%s2318_s15 + $0x18] sm:$0xff]   ;;  %v308_v12 = vld [vmem:[%s2318_s15 + $0x20] sm:$0xff]   ;;  %v310_v13 = vld [vmem:[%s2318_s15 + $0x28] sm:$0xff]   ;;  %p1979_p3 = scmp.ne.s32.totalorder %s2710_s27, %s1978_s17  ;;  %s1982_s8 = sshll.u32 %s2061_s11, 4  ;;  %s1983_s8 = int_to_ptr.vmem [resolvable:$false] %s1982_s8 }
  0x9f   : > { %v312_v14 = vld [vmem:[%s2318_s15 + $0x30] sm:$0xff]   ;;  %v314_v15 = vld [vmem:[%s2318_s15 + $0x38] sm:$0xff]   ;;  %v316_v16 = vld [vmem:[%s2318_s15 + $0x40] sm:$0xff]   ;;  %s1984_s29 = scalar_lea.vmem %s1983_s8, 8192  ;;  %p1985_p12 = scmp.lt.s32.totalorder %s2710_s27, %s1983_s8 }
  0xa0   : > { %1526 = vmatpush3.bf16.msra.mxu0 %v1711_v1  ;;  %v318_v17 = vld [vmem:[%s2318_s15 + $0x48] sm:$0xff]   ;;  %v320_v18 = vld [vmem:[%s2318_s15 + $0x50] sm:$0xff]   ;;  %v322_v19 = vld [vmem:[%s2318_s15 + $0x58] sm:$0xff]   ;;  %p1980_p5 = pnand %p1979_p3, %p2259_p10  ;;  %p1986_p1 = scmp.lt.s32.totalorder %s1984_s29, %s1978_s17 }
  0xa1   : > { %1527 = vmatprep.subr.bf16.mxu0 %v1712_v2  ;;  %v324_v20 = vld [vmem:[%s2318_s15 + $0x60] sm:$0xff]   ;;  %v326_v21 = vld [vmem:[%s2318_s15 + $0x68] sm:$0xff]   ;;  %v328_v22 = vld [vmem:[%s2318_s15 + $0x70] sm:$0xff]  }
  0xa2   : > { %v330_v23 = vld [vmem:[%s2318_s15 + $0x78] sm:$0xff]   ;;  %v1734_v24 = vld [vmem:[#allocation8] sm:$0xff]   ;;  %v1735_v25 = vld [vmem:[#allocation8 + $0x8] sm:$0xff]   ;;  %p1981_p7 = pneg %p1980_p5  ;;  %p1987_p2 = por %p1986_p1, %p1985_p12 }
  0xa3   : > { %1571 = vmatprep.subr.bf16.mxu1 %v1734_v24  ;;  %v1736_v26 = vld [vmem:[#allocation8 + $0x10] sm:$0xff]   ;;  %v1737_v27 = vld [vmem:[#allocation8 + $0x18] sm:$0xff]   ;;  %v1738_v28 = vld [vmem:[#allocation8 + $0x20] sm:$0xff]  }
  0xa4   : > { %1528 = vmatpush3.bf16.msra.mxu0 %v1712_v2  ;;  %1572 = vmatpush3.bf16.msra.mxu1 %v1734_v24  ;;  %v1739_v29 = vld [vmem:[#allocation8 + $0x28] sm:$0xff]   ;;  %v1740_v30 = vld [vmem:[#allocation8 + $0x30] sm:$0xff]   ;;  %v1741_v31 = vld [vmem:[#allocation8 + $0x38] sm:$0xff]   ;;  %p1988_p13 = pnand %p1987_p2, %p1981_p7 }
  0xa5   : > { %1529 = vmatprep.subr.bf16.mxu0 %v1713_v3  ;;  %1573 = vmatprep.subr.bf16.mxu1 %v1735_v25  ;;  %v2357_v32 = vld [vmem:[#allocation7] ss:$0 sm:$0xff] }
  0xa8   : > { %1530 = vmatpush3.bf16.msra.mxu0 %v1713_v3  ;;  %1574 = vmatpush3.bf16.msra.mxu1 %v1735_v25 }
  0xa9   : > { %1531 = vmatprep.subr.bf16.mxu0 %v1714_v5  ;;  %1575 = vmatprep.subr.bf16.mxu1 %v1736_v26 }
  0xac   : > { %1532 = vmatpush3.bf16.msra.mxu0 %v1714_v5  ;;  %1576 = vmatpush3.bf16.msra.mxu1 %v1736_v26 }
  0xad   : > { %1533 = vmatprep.subr.bf16.mxu0 %v1715_v6  ;;  %1577 = vmatprep.subr.bf16.mxu1 %v1737_v27 }
  0xb0   : > { %1534 = vmatpush3.bf16.msra.mxu0 %v1715_v6  ;;  %1578 = vmatpush3.bf16.msra.mxu1 %v1737_v27 }
  0xb1   : > { %1535 = vmatprep.subr.bf16.mxu0 %v1716_v7  ;;  %1579 = vmatprep.subr.bf16.mxu1 %v1738_v28 }
  0xb4   : > { %1536 = vmatpush3.bf16.msra.mxu0 %v1716_v7  ;;  %1580 = vmatpush3.bf16.msra.mxu1 %v1738_v28 }
  0xb5   : > { %1537 = vmatprep.subr.bf16.mxu0 %v1717_v8  ;;  %1581 = vmatprep.subr.bf16.mxu1 %v1739_v29 }
  0xb8   : > { %1538 = vmatpush3.bf16.msra.mxu0 %v1717_v8  ;;  %1582 = vmatpush3.bf16.msra.mxu1 %v1739_v29 }
  0xb9   : > { %1583 = vmatprep.subr.bf16.mxu1 %v1740_v30 }
  0xbb   : > { %1540 = vmatmul.mubr.bf16.vlgmr.msra.gmra.mrb[0].mxu0 %v2334_v9 }
  0xbc   : > { %1543 = vmatprep.mubr.bf16.mxu0 %v2337_v10  ;;  %1584 = vmatpush3.bf16.msra.mxu1 %v1740_v30 }
  0xbd   : > { %1585 = vmatprep.subr.bf16.mxu1 %v1741_v31 }
  0xc0   : > { %1586 = vmatpush3.bf16.msra.mxu1 %v1741_v31 }
  0xc3   : > { %1544 = vmatmul.mubr.bf16.gmra.mrb[4].mxu0 %v2342_v11 }
  0xc4   : > { %1547 = vmatprep.mubr.bf16.mxu0 %v308_v12 }
  0xcb   : > { %1548 = vmatmul.mubr.bf16.gmra.mrb[8].mxu0 %v310_v13 }
  0xcc   : > { %1551 = vmatprep.mubr.bf16.mxu0 %v312_v14 }
  0xd3   : > { %1552 = vmatmul.mubr.bf16.gmra.mrb[12].mxu0 %v314_v15 }
  0xd4   : > { %1555 = vmatprep.mubr.bf16.mxu0 %v316_v16 }
  0xdb   : > { %1556 = vmatmul.mubr.bf16.gmra.mrb[16].mxu0 %v318_v17 }
  0xdc   : > { %1559 = vmatprep.mubr.bf16.mxu0 %v320_v18 }
  0xe3   : > { %1560 = vmatmul.mubr.bf16.gmra.mrb[20].mxu0 %v322_v19 }
  0xe4   : > { %1563 = vmatprep.mubr.bf16.mxu0 %v324_v20 }
  0xeb   : > { %1564 = vmatmul.mubr.bf16.gmra.mrb[24].mxu0 %v326_v21 }
  0xec   : > { %1567 = vmatprep.mubr.bf16.mxu0 %v328_v22 }
  0xf3   : > { %1568 = vmatmul.mubr.bf16.gmra.mrb[28].mxu0 %v330_v23 }
 0x18e   : > { %v1541_v33 = vpop.f32.mrb[0].mxu0 }
 0x18f   : > { %v542_v34 = vadd.f32 %v1541_v33, %v2357_v32  ;;  %v533_v35 = vpop.f32.mrb[1].mxu0 }
 0x190   : > { %v2361_v36 = vadd.f32 %v2357_v32, %v533_v35  ;;  %v1542_v37 = vpop.f32.mrb[2].mxu0 }
 0x191   : > { %v694_v38 = vmul.f32 0.044715, %v542_v34  ;;  %v2364_v39 = vadd.f32 %v1542_v37, %v2357_v32  ;;  %v536_v40 = vpop.f32.mrb[3].mxu0  ;;  %v662_v28 = vmul.f32 0.5, %v542_v34 }
 0x192   : > { %v692_v41 = vmul.f32 0.044715, %v2361_v36  ;;  %v2368_v42 = vadd.f32 %v2357_v32, %v536_v40 }
 0x193   : > { %v726_v43 = vmul.f32 %v694_v38, %v542_v34  ;;  %v695_v44 = vmul.f32 0.044715, %v2364_v39  ;;  %v660_v38 = vmul.f32 0.5, %v2361_v36 }
 0x194   : > { %v693_v45 = vmul.f32 0.044715, %v2368_v42  ;;  %v724_v46 = vmul.f32 %v692_v41, %v2361_v36 }
 0x195   : > { %v758_v47 = vmul.f32 %v726_v43, %v542_v34  ;;  %v727_v48 = vmul.f32 %v695_v44, %v2364_v39 }
 0x196   : > { %v1545_v49 = vpop.f32.mrb[4].mxu0  ;;  %v725_v50 = vmul.f32 %v693_v45, %v2368_v42  ;;  %v756_v51 = vmul.f32 %v724_v46, %v2361_v36 }
 0x197   : > { %v759_v52 = vmul.f32 %v727_v48, %v2364_v39  ;;  %v2378_v53 = vadd.f32 %v1545_v49, %v2357_v32  ;;  %v549_v54 = vpop.f32.mrb[5].mxu0  ;;  %v790_v55 = vadd.f32 %v758_v47, %v542_v34  ;;  %v661_v47 = vmul.f32 0.5, %v2368_v42 }
 0x198   : > { %v550_v56 = vadd.f32 %v2357_v32, %v549_v54  ;;  %v1546_v57 = vpop.f32.mrb[6].mxu0  ;;  %v757_v58 = vmul.f32 %v725_v50, %v2368_v42  ;;  %v788_v59 = vadd.f32 %v756_v51, %v2361_v36  ;;  %v663_v48 = vmul.f32 0.5, %v2364_v39 }
 0x199   : > { %v698_v60 = vmul.f32 0.044715, %v2378_v53  ;;  %v2385_v61 = vadd.f32 %v1546_v57, %v2357_v32  ;;  %v552_v62 = vpop.f32.mrb[7].mxu0  ;;  %v791_v63 = vadd.f32 %v759_v52, %v2364_v39  ;;  %v822_v0 = vmul.f32 0.7978846, %v790_v55 }
 0x19a   : > { %v696_v1 = vmul.f32 0.044715, %v550_v56  ;;  %v553_v2 = vadd.f32 %v2357_v32, %v552_v62  ;;  %v789_v3 = vadd.f32 %v757_v58, %v2368_v42  ;;  %v820_v4 = vmul.f32 0.7978846, %v788_v59 }
 0x19b   : > { %v730_v5 = vmul.f32 %v698_v60, %v2378_v53  ;;  %v699_v6 = vmul.f32 0.044715, %v2385_v61  ;;  %v823_v7 = vmul.f32 0.7978846, %v791_v63  ;;  %1758 = vtanh.f32 %v822_v0 }
 0x19c   : > { %v728_v8 = vmul.f32 %v696_v1, %v550_v56  ;;  %v697_v12 = vmul.f32 0.044715, %v553_v2  ;;  %v821_v13 = vmul.f32 0.7978846, %v789_v3  ;;  %1760 = vtanh.f32 %v820_v4 }
 0x19d   : > { %v762_v14 = vmul.f32 %v730_v5, %v2378_v53  ;;  %v731_v15 = vmul.f32 %v699_v6, %v2385_v61  ;;  %1762 = vtanh.f32 %v823_v7  ;;  %v2417_v52 = vmul.f32 0.5, %v550_v56 }
 0x19e   : > { %v760_v16 = vmul.f32 %v728_v8, %v550_v56  ;;  %v729_v17 = vmul.f32 %v697_v12, %v553_v2  ;;  %v1549_v18 = vpop.f32.mrb[8].mxu0  ;;  %1764 = vtanh.f32 %v821_v13  ;;  %v665_v59 = vmul.f32 0.5, %v553_v2 }
 0x19f   : > { %v763_v19 = vmul.f32 %v731_v15, %v2385_v61  ;;  %v565_v20 = vpop.f32.mrb[9].mxu0  ;;  %v794_v25 = vadd.f32 %v762_v14, %v2378_v53  ;;  %v2400_v26 = vadd.f32 %v1549_v18, %v2357_v32  ;;  %v667_v14 = vmul.f32 0.5, %v2385_v61 }
 0x1a0   : > { %v761_v21 = vmul.f32 %v729_v17, %v553_v2  ;;  %v2396_v22 = vadd.f32 %v2357_v32, %v565_v20  ;;  %v1550_v23 = vpop.f32.mrb[10].mxu0  ;;  %v792_v24 = vadd.f32 %v760_v16, %v550_v56 }
 0x1a1   : > { %v568_v27 = vpop.f32.mrb[11].mxu0  ;;  %v795_v29 = vadd.f32 %v763_v19, %v2385_v61  ;;  %v2408_v37 = vadd.f32 %v1550_v23, %v2357_v32  ;;  %v826_v40 = vmul.f32 0.7978846, %v794_v25  ;;  %v702_v46 = vmul.f32 0.044715, %v2400_v26 }
 0x1a2   : > { %v700_v30 = vmul.f32 0.044715, %v2396_v22  ;;  %v2405_v31 = vadd.f32 %v2357_v32, %v568_v27  ;;  %v793_v33 = vadd.f32 %v761_v21, %v553_v2  ;;  %v824_v35 = vmul.f32 0.7978846, %v792_v24 }
 0x1a3   : > { %v827_v41 = vmul.f32 0.7978846, %v795_v29  ;;  %v703_v42 = vmul.f32 0.044715, %v2408_v37  ;;  %v734_v56 = vmul.f32 %v702_v46, %v2400_v26  ;;  %v666_v2 = vmul.f32 0.5, %v2378_v53 }
 0x1a4   : > { %v732_v43 = vmul.f32 %v700_v30, %v2396_v22  ;;  %v701_v34 = vmul.f32 0.044715, %v2405_v31  ;;  %v825_v44 = vmul.f32 0.7978846, %v793_v33  ;;  %1766 = vtanh.f32 %v824_v35 }
 0x1a5   : > { %v1759_v45 = vpop.eup %1758  ;;  %1768 = vtanh.f32 %v826_v40  ;;  %v735_v16 = vmul.f32 %v703_v42, %v2408_v37  ;;  %v2439_v53 = vmul.f32 0.5, %v2400_v26  ;;  %v766_v25 = vmul.f32 %v734_v56, %v2400_v26 }
 0x1a6   : > { %v1761_v49 = vpop.eup %1760  ;;  %v733_v50 = vmul.f32 %v701_v34, %v2405_v31  ;;  %v1553_v36 = vpop.f32.mrb[12].mxu0  ;;  %v886_v51 = vadd.f32 1.0, %v1759_v45  ;;  %1770 = vtanh.f32 %v825_v44  ;;  %v764_v55 = vmul.f32 %v732_v43, %v2396_v22 }
 0x1a7   : > { %v1763_v54 = vpop.eup %1762  ;;  %v581_v57 = vpop.f32.mrb[13].mxu0  ;;  %v884_v58 = vadd.f32 1.0, %v1761_v49  ;;  %1772 = vtanh.f32 %v827_v41  ;;  %v2427_v1 = vadd.f32 %v1553_v36, %v2357_v32  ;;  %v2452_v40 = vmul.f32 0.5, %v2396_v22 }
 0x1a8   : > { %v1765_v60 = vpop.eup %1764  ;;  %v765_v39 = vmul.f32 %v733_v50, %v2405_v31  ;;  %v2423_v62 = vadd.f32 %v2357_v32, %v581_v57  ;;  %v1554_v63 = vpop.f32.mrb[14].mxu0  ;;  %v887_v0 = vadd.f32 1.0, %v1763_v54  ;;  %v918_v7 = vmul.f32 %v886_v51, %v662_v28 }
 0x1a9   : > { %v584_v3 = vpop.f32.mrb[15].mxu0  ;;  %v885_v4 = vadd.f32 1.0, %v1765_v60  ;;  %v916_v12 = vmul.f32 %v884_v58, %v660_v38  ;;  %v796_v15 = vadd.f32 %v764_v55, %v2396_v22  ;;  %v706_v19 = vmul.f32 0.044715, %v2427_v1 }
 0x1aa   : > { %v704_v5 = vmul.f32 0.044715, %v2423_v62  ;;  %v2432_v6 = vadd.f32 %v2357_v32, %v584_v3  ;;  %v919_v8 = vmul.f32 %v887_v0, %v663_v48  ;;  %v797_v18 = vadd.f32 %v765_v39, %v2405_v31 }
 0x1ab   : > { %v917_v13 = vmul.f32 %v885_v4, %v661_v47  ;;  %v828_v23 = vmul.f32 0.7978846, %v796_v15  ;;  %v2446_v27 = vadd.f32 %v1554_v63, %v2357_v32  ;;  %v767_v43 = vmul.f32 %v735_v16, %v2408_v37 }
 0x1ac   : > { %v949_v17 = vpack.c.bf16 %v919_v8, %v918_v7  ;;  %v705_v20 = vmul.f32 0.044715, %v2432_v6  ;;  %v736_v61 = vmul.f32 %v704_v5, %v2423_v62  ;;  %v829_v29 = vmul.f32 0.7978846, %v797_v18 }
 0x1ad   : > { %v948_v21 = vpack.c.bf16 %v917_v13, %v916_v12  ;;  %1774 = vtanh.f32 %v828_v23  ;;  %v738_v47 = vmul.f32 %v706_v19, %v2427_v1  ;;  %v707_v51 = vmul.f32 0.044715, %v2446_v27 }
 0x1ae   : > { %v1767_v24 = vpop.eup %1766  ;;  %v1557_v28 = vpop.f32.mrb[16].mxu0  ;;  %1776 = vtanh.f32 %v829_v29  ;;  %v737_v48 = vmul.f32 %v705_v20, %v2432_v6  ;;  %v768_v36 = vmul.f32 %v736_v61, %v2423_v62  ;;  %v798_v42 = vadd.f32 %v766_v25, %v2400_v26 }
 0x1af   : > { %v1769_v30 = vpop.eup %1768  ;;  %v2449_v33 = vadd.f32 %v1557_v28, %v2357_v32  ;;  %v597_v35 = vpop.f32.mrb[17].mxu0  ;;  %1587 = vmatprep.mubr.bf16.mxu1 %v948_v21  ;;  %v888_v38 = vadd.f32 1.0, %v1767_v24  ;;  %v799_v56 = vadd.f32 %v767_v43, %v2408_v37  ;;  %v739_v8 = vmul.f32 %v707_v51, %v2446_v27 }
 0x1b0   : > { %v1771_v41 = vpop.eup %1770  ;;  %v2456_v34 = vadd.f32 %v2357_v32, %v597_v35  ;;  %v1558_v44 = vpop.f32.mrb[18].mxu0  ;;  %1588 = vmatmul.mubr.bf16.vlgmr.msra.gmra.mrb[0].mxu1 %v949_v17  ;;  %v890_v45 = vadd.f32 1.0, %v1769_v30  ;;  %v769_v3 = vmul.f32 %v737_v48, %v2432_v6  ;;  %v830_v7 = vmul.f32 0.7978846, %v798_v42 }
 0x1b1   : > { %v1773_v46 = vpop.eup %1772  ;;  %v2461_v49 = vadd.f32 %v1558_v44, %v2357_v32  ;;  %v600_v22 = vpop.f32.mrb[19].mxu0  ;;  %v889_v50 = vadd.f32 1.0, %v1771_v41  ;;  %v710_v54 = vmul.f32 0.044715, %v2449_v33  ;;  %v920_v58 = vmul.f32 %v888_v38, %v2417_v52 }
 0x1b2   : > { %v891_v55 = vadd.f32 1.0, %v1773_v46  ;;  %v708_v57 = vmul.f32 0.044715, %v2456_v34  ;;  %v2470_v39 = vadd.f32 %v2357_v32, %v600_v22  ;;  %v922_v63 = vmul.f32 %v890_v45, %v666_v2 }
 0x1b3   : > { %v921_v60 = vmul.f32 %v889_v50, %v665_v59  ;;  %v711_v4 = vmul.f32 0.044715, %v2461_v49  ;;  %v669_v59 = vmul.f32 0.5, %v2405_v31  ;;  %v831_v26 = vmul.f32 0.7978846, %v799_v56 }
 0x1b4   : > { %v923_v0 = vmul.f32 %v891_v55, %v667_v14  ;;  %v770_v13 = vmul.f32 %v738_v47, %v2427_v1  ;;  %v742_v2 = vmul.f32 %v710_v54, %v2449_v33  ;;  %1778 = vtanh.f32 %v830_v7 }
 0x1b5   : > { %v950_v5 = vpack.c.bf16 %v921_v60, %v920_v58  ;;  %v740_v16 = vmul.f32 %v708_v57, %v2456_v34  ;;  %v709_v17 = vmul.f32 0.044715, %v2470_v39  ;;  %1780 = vtanh.f32 %v831_v26 }
 0x1b6   : > { %v1561_v12 = vpop.f32.mrb[20].mxu0  ;;  %v951_v52 = vpack.c.bf16 %v923_v0, %v922_v63  ;;  %v743_v20 = vmul.f32 %v711_v4, %v2461_v49  ;;  %v671_v23 = vmul.f32 0.5, %v2408_v37  ;;  %v800_v24 = vadd.f32 %v768_v36, %v2423_v62 }
 0x1b7   : > { %v2480_v14 = vadd.f32 %v1561_v12, %v2357_v32  ;;  %v613_v15 = vpop.f32.mrb[21].mxu0  ;;  %1591 = vmatprep.mubr.bf16.mxu1 %v950_v5  ;;  %v1775_v31 = vpop.eup %1774  ;;  %v801_v25 = vadd.f32 %v769_v3, %v2432_v6  ;;  %v771_v28 = vmul.f32 %v739_v8, %v2446_v27  ;;  %v2499_v38 = vmul.f32 %v742_v2, %v2449_v33 }
 0x1b8   : > { %v2485_v18 = vadd.f32 %v2357_v32, %v613_v15  ;;  %v1562_v19 = vpop.f32.mrb[22].mxu0  ;;  %1592 = vmatmul.mubr.bf16.gmra.mrb[4].mxu1 %v951_v52  ;;  %v1777_v61 = vpop.eup %1776  ;;  %v892_v35 = vadd.f32 1.0, %v1775_v31  ;;  %v832_v43 = vmul.f32 0.7978846, %v800_v24  ;;  %v772_v44 = vmul.f32 %v740_v16, %v2456_v34 }
 0x1b9   : > { %v616_v21 = vpop.f32.mrb[23].mxu0  ;;  %v2493_v29 = vadd.f32 %v1562_v19, %v2357_v32  ;;  %v714_v41 = vmul.f32 0.044715, %v2480_v14  ;;  %v893_v37 = vadd.f32 1.0, %v1777_v61  ;;  %v741_v45 = vmul.f32 %v709_v17, %v2470_v39 }
 0x1ba   : > { %v2496_v30 = vadd.f32 %v2357_v32, %v616_v21  ;;  %v712_v46 = vmul.f32 0.044715, %v2485_v18  ;;  %v833_v47 = vmul.f32 0.7978846, %v801_v25  ;;  %v2506_v48 = vmul.f32 %v743_v20, %v2461_v49 }
 0x1bb   : > { %v924_v22 = vmul.f32 %v892_v35, %v2452_v40  ;;  %v925_v50 = vmul.f32 %v893_v37, %v669_v59  ;;  %1782 = vtanh.f32 %v832_v43  ;;  %v715_v36 = vmul.f32 0.044715, %v2493_v29 }
 0x1bc   : > { %v713_v51 = vmul.f32 0.044715, %v2496_v30  ;;  %v2512_v55 = vmul.f32 0.5, %v2423_v62  ;;  %1784 = vtanh.f32 %v833_v47  ;;  %v746_v57 = vmul.f32 %v714_v41, %v2480_v14 }
 0x1bd   : > { %v952_v42 = vpack.c.bf16 %v925_v50, %v924_v22  ;;  %v802_v40 = vadd.f32 %v770_v13, %v2427_v1  ;;  %v773_v63 = vmul.f32 %v741_v45, %v2470_v39  ;;  %v744_v0 = vmul.f32 %v712_v46, %v2485_v18 }
 0x1be   : > { %v1565_v54 = vpop.f32.mrb[24].mxu0  ;;  %v673_v3 = vmul.f32 0.5, %v2432_v6  ;;  %v803_v62 = vadd.f32 %v771_v28, %v2446_v27  ;;  %v1779_v4 = vpop.eup %1778  ;;  %v2530_v12 = vmul.f32 0.5, %v2427_v1  ;;  %v747_v26 = vmul.f32 %v715_v36, %v2493_v29 }
 0x1bf   : > { %v2516_v58 = vadd.f32 %v1565_v54, %v2357_v32  ;;  %v629_v60 = vpop.f32.mrb[25].mxu0  ;;  %1595 = vmatprep.mubr.bf16.mxu1 %v952_v42  ;;  %v834_v52 = vmul.f32 0.7978846, %v802_v40  ;;  %v1781_v59 = vpop.eup %1780  ;;  %v745_v6 = vmul.f32 %v713_v51, %v2496_v30  ;;  %v894_v13 = vadd.f32 1.0, %v1779_v4 }
 0x1c0   : > { %v1566_v56 = vpop.f32.mrb[26].mxu0  ;;  %v2524_v5 = vadd.f32 %v2357_v32, %v629_v60  ;;  %v835_v2 = vmul.f32 0.7978846, %v803_v62  ;;  %v2535_v15 = vmul.f32 %v746_v57, %v2480_v14  ;;  %v895_v16 = vadd.f32 1.0, %v1781_v59 }
 0x1c1   : > { %v2527_v7 = vadd.f32 %v1566_v56, %v2357_v32  ;;  %v632_v8 = vpop.f32.mrb[27].mxu0  ;;  %1786 = vtanh.f32 %v834_v52  ;;  %v776_v19 = vmul.f32 %v744_v0, %v2485_v18  ;;  %v718_v1 = vmul.f32 0.044715, %v2516_v58 }
 0x1c2   : > { %v2538_v17 = vadd.f32 %v2357_v32, %v632_v8  ;;  %v675_v31 = vmul.f32 0.5, %v2446_v27  ;;  %1788 = vtanh.f32 %v835_v2  ;;  %v716_v20 = vmul.f32 0.044715, %v2524_v5 }
 0x1c3   : > { %v926_v21 = vmul.f32 %v894_v13, %v2439_v53  ;;  %v927_v24 = vmul.f32 %v895_v16, %v671_v23  ;;  %v804_v25 = vadd.f32 %v772_v44, %v2456_v34  ;;  %v779_v61 = vmul.f32 %v747_v26, %v2493_v29 }
 0x1c4   : > { %v777_v28 = vmul.f32 %v745_v6, %v2496_v30  ;;  %v719_v35 = vmul.f32 0.044715, %v2527_v7  ;;  %v805_v37 = vadd.f32 %v773_v63, %v2470_v39  ;;  %v717_v27 = vmul.f32 0.044715, %v2538_v17 }
 0x1c5   : > { %v1783_v43 = vpop.eup %1782  ;;  %v953_v45 = vpack.c.bf16 %v927_v24, %v926_v21  ;;  %v836_v23 = vmul.f32 0.7978846, %v804_v25  ;;  %v750_v44 = vmul.f32 %v718_v1, %v2516_v58  ;;  %v748_v54 = vmul.f32 %v716_v20, %v2524_v5 }
 0x1c6   : > { %v1569_v41 = vpop.f32.mrb[28].mxu0  ;;  %v1785_v47 = vpop.eup %1784  ;;  %v896_v50 = vadd.f32 1.0, %v1783_v43  ;;  %v837_v51 = vmul.f32 0.7978846, %v805_v37  ;;  %v751_v40 = vmul.f32 %v719_v35, %v2527_v7  ;;  %v676_v0 = vmul.f32 0.5, %v2456_v34 }
 0x1c7   : > { %v2552_v46 = vadd.f32 %v1569_v41, %v2357_v32  ;;  %v645_v53 = vpop.f32.mrb[29].mxu0  ;;  %1596 = vmatmul.mubr.bf16.gmra.mrb[8].mxu1 %v953_v45  ;;  %v897_v57 = vadd.f32 1.0, %v1785_v47  ;;  %1790 = vtanh.f32 %v836_v23  ;;  %v749_v56 = vmul.f32 %v717_v27, %v2538_v17 }
 0x1c8   : > { %v2556_v22 = vadd.f32 %v2357_v32, %v645_v53  ;;  %v1570_v36 = vpop.f32.mrb[30].mxu0  ;;  %1792 = vtanh.f32 %v837_v51  ;;  %v928_v4 = vmul.f32 %v896_v50, %v2512_v55  ;;  %v806_v26 = vadd.f32 %v2499_v38, %v2449_v33 }
 0x1c9   : > { %v2560_v60 = vadd.f32 %v1570_v36, %v2357_v32  ;;  %v648_v42 = vpop.f32.mrb[31].mxu0  ;;  %v929_v8 = vmul.f32 %v897_v57, %v673_v3  ;;  %v722_v52 = vmul.f32 0.044715, %v2552_v46  ;;  %v782_v34 = vmul.f32 %v750_v44, %v2516_v58 }
 0x1ca   : > { %v2564_v63 = vadd.f32 %v2357_v32, %v648_v42  ;;  %v720_v62 = vmul.f32 0.044715, %v2556_v22  ;;  %v807_v32 = vadd.f32 %v2506_v48, %v2461_v49  ;;  %v780_v13 = vmul.f32 %v748_v54, %v2524_v5 }
 0x1cb   : > { %v1787_v6 = vpop.eup %1786  ;;  %v954_v2 = vpack.c.bf16 %v929_v8, %v928_v4  ;;  %v677_v16 = vmul.f32 0.5, %v2470_v39  ;;  %v783_v3 = vmul.f32 %v751_v40, %v2527_v7  ;;  %v723_v1 = vmul.f32 0.044715, %v2560_v60 }
 0x1cc   : > { %v721_v59 = vmul.f32 0.044715, %v2564_v63  ;;  %v1789_v55 = vpop.eup %1788  ;;  %v898_v20 = vadd.f32 1.0, %v1787_v6  ;;  %v838_v21 = vmul.f32 0.7978846, %v806_v26  ;;  %v752_v38 = vmul.f32 %v720_v62, %v2556_v22 }
 0x1cd   : > { %1599 = vmatprep.mubr.bf16.mxu1 %v954_v2  ;;  %v899_v24 = vadd.f32 1.0, %v1789_v55  ;;  %v839_v25 = vmul.f32 0.7978846, %v807_v32  ;;  %v781_v35 = vmul.f32 %v749_v56, %v2538_v17  ;;  %v754_v41 = vmul.f32 %v722_v52, %v2552_v46 }
 0x1ce   : > { %v753_v48 = vmul.f32 %v721_v59, %v2564_v63  ;;  %1794 = vtanh.f32 %v838_v21  ;;  %v808_v39 = vadd.f32 %v776_v19, %v2485_v18  ;;  %v930_v37 = vmul.f32 %v898_v20, %v2530_v12 }
 0x1cf   : > { %v931_v43 = vmul.f32 %v899_v24, %v675_v31  ;;  %1796 = vtanh.f32 %v839_v25  ;;  %v809_v45 = vadd.f32 %v777_v28, %v2496_v30  ;;  %v755_v27 = vmul.f32 %v723_v1, %v2560_v60 }
 0x1d0   : > { %v840_v53 = vmul.f32 0.7978846, %v808_v39  ;;  %v810_v23 = vadd.f32 %v2535_v15, %v2480_v14  ;;  %v811_v47 = vadd.f32 %v779_v61, %v2493_v29  ;;  %v784_v50 = vmul.f32 %v752_v38, %v2556_v22 }
 0x1d1   : > { %v1791_v44 = vpop.eup %1790  ;;  %v955_v36 = vpack.c.bf16 %v931_v43, %v930_v37  ;;  %v785_v19 = vmul.f32 %v753_v48, %v2564_v63  ;;  %v841_v51 = vmul.f32 0.7978846, %v809_v45  ;;  %v812_v42 = vadd.f32 %v780_v13, %v2524_v5 }
 0x1d2   : > { %v1793_v12 = vpop.eup %1792  ;;  %v900_v31 = vadd.f32 1.0, %v1791_v44  ;;  %1798 = vtanh.f32 %v840_v53  ;;  %v842_v54 = vmul.f32 0.7978846, %v810_v23  ;;  %v843_v28 = vmul.f32 0.7978846, %v811_v47 }
 0x1d3   : > { %1600 = vmatmul.mubr.bf16.gmra.mrb[12].mxu1 %v955_v36  ;;  %v901_v57 = vadd.f32 1.0, %v1793_v12  ;;  %1800 = vtanh.f32 %v841_v51  ;;  %v813_v15 = vadd.f32 %v781_v35, %v2538_v17  ;;  %v844_v56 = vmul.f32 0.7978846, %v812_v42 }
 0x1d4   : > { %v932_v61 = vmul.f32 %v900_v31, %v676_v0  ;;  %1802 = vtanh.f32 %v842_v54  ;;  %v786_v4 = vmul.f32 %v754_v41, %v2552_v46  ;;  %v787_v8 = vmul.f32 %v755_v27, %v2560_v60 }
 0x1d5   : > { %v933_v40 = vmul.f32 %v901_v57, %v677_v16  ;;  %1804 = vtanh.f32 %v843_v28  ;;  %v845_v62 = vmul.f32 0.7978846, %v813_v15  ;;  %v814_v52 = vadd.f32 %v782_v34, %v2516_v58 }
 0x1d6   : > { %v815_v59 = vadd.f32 %v783_v3, %v2527_v7  ;;  %1806 = vtanh.f32 %v844_v56  ;;  %v816_v32 = vadd.f32 %v784_v50, %v2556_v22  ;;  %v817_v6 = vadd.f32 %v785_v19, %v2564_v63 }
 0x1d7   : > { %v956_v26 = vpack.c.bf16 %v933_v40, %v932_v61  ;;  %v678_v13 = vmul.f32 0.5, %v2449_v33  ;;  %1808 = vtanh.f32 %v845_v62  ;;  %v846_v2 = vmul.f32 0.7978846, %v814_v52 }
 0x1d8   : > { %v1795_v0 = vpop.eup %1794  ;;  %v847_v16 = vmul.f32 0.7978846, %v815_v59  ;;  %v679_v1 = vmul.f32 0.5, %v2461_v49  ;;  %v848_v34 = vmul.f32 0.7978846, %v816_v32  ;;  %v818_v38 = vadd.f32 %v786_v4, %v2552_v46 }
 0x1d9   : > { %v1797_v55 = vpop.eup %1796  ;;  %1603 = vmatprep.mubr.bf16.mxu1 %v956_v26  ;;  %v902_v20 = vadd.f32 1.0, %v1795_v0  ;;  %v849_v21 = vmul.f32 0.7978846, %v817_v6  ;;  %1810 = vtanh.f32 %v846_v2  ;;  %v819_v24 = vadd.f32 %v787_v8, %v2560_v60 }
 0x1da   : > { %v903_v3 = vadd.f32 1.0, %v1797_v55  ;;  %1812 = vtanh.f32 %v847_v16  ;;  %v850_v35 = vmul.f32 0.7978846, %v818_v38  ;;  %v680_v37 = vmul.f32 0.5, %v2485_v18 }
 0x1db   : > { %v934_v48 = vmul.f32 %v902_v20, %v678_v13  ;;  %1814 = vtanh.f32 %v848_v34  ;;  %v851_v41 = vmul.f32 0.7978846, %v819_v24  ;;  %v681_v27 = vmul.f32 0.5, %v2496_v30 }
 0x1dc   : > { %v1799_v25 = vpop.eup %1798  ;;  %v935_v33 = vmul.f32 %v903_v3, %v679_v1  ;;  %1816 = vtanh.f32 %v849_v21  ;;  %v682_v47 = vmul.f32 0.5, %v2480_v14  ;;  %v683_v19 = vmul.f32 0.5, %v2493_v29 }
 0x1dd   : > { %v1801_v39 = vpop.eup %1800  ;;  %v904_v49 = vadd.f32 1.0, %v1799_v25  ;;  %1818 = vtanh.f32 %v850_v35  ;;  %v684_v30 = vmul.f32 0.5, %v2524_v5  ;;  %v685_v42 = vmul.f32 0.5, %v2538_v17  ;;  %v1822_v25 = vld [vmem:[%s2318_s15] sm:$0xff]  }
 0x1de   : > { %v1803_v43 = vpop.eup %1802  ;;  %v957_v45 = vpack.c.bf16 %v935_v33, %v934_v48  ;;  %v905_v53 = vadd.f32 1.0, %v1801_v39  ;;  %1820 = vtanh.f32 %v851_v41  ;;  %v686_v8 = vmul.f32 0.5, %v2516_v58 }
 0x1df   : > { %v1805_v23 = vpop.eup %1804  ;;  %v906_v44 = vadd.f32 1.0, %v1803_v43  ;;  %v936_v50 = vmul.f32 %v904_v49, %v680_v37  ;;  %v687_v52 = vmul.f32 0.5, %v2527_v7  ;;  %v688_v5 = vmul.f32 0.5, %v2556_v22 }
 0x1e0   : > { %1604 = vmatmul.mubr.bf16.gmra.mrb[16].mxu1 %v957_v45  ;;  %v937_v36 = vmul.f32 %v905_v53, %v681_v27  ;;  %v907_v51 = vadd.f32 1.0, %v1805_v23  ;;  %v1807_v18 = vpop.eup %1806  ;;  %v689_v2 = vmul.f32 0.5, %v2564_v63  ;;  %v690_v58 = vmul.f32 0.5, %v2552_v46  ;;  %v2618_v63 = vld [vmem:[#allocation10] ss:$0 sm:$0xff] }
 0x1e1   : > { %v1809_v12 = vpop.eup %1808  ;;  %v938_v54 = vmul.f32 %v906_v44, %v682_v47  ;;  %v908_v57 = vadd.f32 1.0, %v1807_v18  ;;  %v691_v7 = vmul.f32 0.5, %v2560_v60  ;;  %v1198_v46 = vunpack.c.l.bf16 %v2334_v9 }
 0x1e2   : > { %v958_v31 = vpack.c.bf16 %v937_v36, %v936_v50  ;;  %v939_v28 = vmul.f32 %v907_v51, %v683_v19  ;;  %v909_v15 = vadd.f32 1.0, %v1809_v12  ;;  %v1196_v60 = vunpack.c.l.bf16 %v1822_v25 }
 0x1e3   : > { %v1811_v14 = vpop.eup %1810  ;;  %v940_v56 = vmul.f32 %v908_v57, %v684_v30  ;;  %v1199_v39 = vunpack.c.h.bf16 %v2334_v9  ;;  %v1197_v37 = vunpack.c.h.bf16 %v1822_v25  ;;  %v1202_v50 = vunpack.c.l.bf16 %v2342_v11 }
 0x1e4   : > { %1607 = vmatprep.mubr.bf16.mxu1 %v958_v31  ;;  %v959_v61 = vpack.c.bf16 %v939_v28, %v938_v54  ;;  %v1813_v40 = vpop.eup %1812  ;;  %v941_v62 = vmul.f32 %v909_v15, %v685_v42  ;;  %v910_v4 = vadd.f32 1.0, %v1811_v14  ;;  %v1200_v19 = vunpack.c.l.bf16 %v2337_v10  ;;  %v1823_v28 = vld [vmem:[%s2318_s15 + $0x10] sm:$0xff]  }
 0x1e5   : > { %v1815_v29 = vpop.eup %1814  ;;  %v911_v59 = vadd.f32 1.0, %v1813_v40  ;;  %v1203_v12 = vunpack.c.h.bf16 %v2342_v11  ;;  %v1201_v57 = vunpack.c.h.bf16 %v1823_v28  ;;  %v1824_v11 = vld [vmem:[%s2318_s15 + $0x28] sm:$0xff]   ;;  %v1830_v28 = vld [vmem:[%s2318_s15 + $0x58] sm:$0xff]  }
 0x1e6   : > { %v1817_v26 = vpop.eup %1816  ;;  %v960_v32 = vpack.c.bf16 %v941_v62, %v940_v56  ;;  %v912_v6 = vadd.f32 1.0, %v1815_v29  ;;  %v942_v0 = vmul.f32 %v910_v4, %v686_v8  ;;  %v1206_v56 = vunpack.c.l.bf16 %v1824_v11  ;;  %v1825_v4 = vld [vmem:[%s2318_s15 + $0x20] sm:$0xff]  }
 0x1e7   : > { %v1819_v17 = vpop.eup %1818  ;;  %v943_v13 = vmul.f32 %v911_v59, %v687_v52  ;;  %v913_v16 = vadd.f32 1.0, %v1817_v26  ;;  %v1204_v29 = vunpack.c.l.bf16 %v1825_v4  ;;  %v1207_v59 = vunpack.c.h.bf16 %v1824_v11 }
 0x1e8   : > { %1608 = vmatmul.mubr.bf16.gmra.mrb[20].mxu1 %v959_v61  ;;  %v1821_v55 = vpop.eup %1820  ;;  %v914_v1 = vadd.f32 1.0, %v1819_v17  ;;  %v944_v34 = vmul.f32 %v912_v6, %v688_v5  ;;  %v1205_v5 = vunpack.c.h.bf16 %v1825_v4 }
 0x1e9   : > { %1611 = vmatprep.mubr.bf16.mxu1 %v960_v32  ;;  %v961_v20 = vpack.c.bf16 %v943_v13, %v942_v0  ;;  %v945_v22 = vmul.f32 %v913_v16, %v689_v2  ;;  %v915_v21 = vadd.f32 1.0, %v1821_v55 }
 0x1ea   : > { %v946_v38 = vmul.f32 %v914_v1, %v690_v58  ;;  %v1826_v58 = vld [vmem:[%s2318_s15 + $0x38] sm:$0xff]  }
 0x1eb   : > { %v962_v3 = vpack.c.bf16 %v945_v22, %v944_v34  ;;  %v947_v24 = vmul.f32 %v915_v21, %v691_v7  ;;  %v1210_v7 = vunpack.c.l.bf16 %v1826_v58 }
 0x1ed   : > { %v963_v48 = vpack.c.bf16 %v947_v24, %v946_v38 }
 0x1f0   : > { %1612 = vmatmul.mubr.bf16.gmra.mrb[24].mxu1 %v961_v20  ;;  %v1827_v20 = vld [vmem:[%s2318_s15 + $0x30] sm:$0xff]  }
 0x1f1   : > { %1615 = vmatprep.mubr.bf16.mxu1 %v962_v3  ;;  %v1208_v34 = vunpack.c.l.bf16 %v1827_v20  ;;  %v1211_v3 = vunpack.c.h.bf16 %v1826_v58 }
 0x1f8   : > { %1616 = vmatmul.mubr.bf16.gmra.mrb[28].mxu1 %v963_v48  ;;  %v1209_v48 = vunpack.c.h.bf16 %v1827_v20 }
 0x283   : > { %v1589_v33 = vpop.f32.mrb[0].mxu1 }
 0x284   : > { %v1078_v35 = vadd.f32 %v1589_v33, %v2618_v63  ;;  %v1069_v41 = vpop.f32.mrb[1].mxu1 }
 0x285   : > { %v1070_v49 = vadd.f32 %v2618_v63, %v1069_v41  ;;  %v1590_v43 = vpop.f32.mrb[2].mxu1 }
 0x286   : > { %v1230_v45 = vadd.f32 %v1198_v46, %v1078_v35  ;;  %v1081_v27 = vadd.f32 %v1590_v43, %v2618_v63  ;;  %v1072_v53 = vpop.f32.mrb[3].mxu1 }
 0x287   : > { %v1228_v23 = vadd.f32 %v1196_v60, %v1070_v49  ;;  %v1073_v47 = vadd.f32 %v2618_v63, %v1072_v53 }
 0x288   : > { %1262 = vst [vmem:[%s2628_s26 + $0x10] sm:$0xff] %v1230_v45  ;;  %v1231_v9 = vadd.f32 %v1199_v39, %v1081_v27  ;;  %v1829_v45 = vld [vmem:[%s2318_s15 + $0x40] sm:$0xff]  }
 0x289   : > { %1260 = vst [vmem:[%s2628_s26] sm:$0xff] %v1228_v23  ;;  %v1229_v44 = vadd.f32 %v1197_v37, %v1073_v47  ;;  %v1828_v37 = vld [vmem:[%s2318_s15 + $0x48] sm:$0xff]   ;;  %v1212_v27 = vunpack.c.l.bf16 %v1829_v45 }
 0x28a   : > { %1263 = vst [vmem:[%s2628_s26 + $0x18] sm:$0xff] %v1231_v9  ;;  %v1214_v49 = vunpack.c.l.bf16 %v1828_v37  ;;  %v1215_v47 = vunpack.c.h.bf16 %v1828_v37 }
 0x28b   : > { %1261 = vst [vmem:[%s2628_s26 + $0x8] sm:$0xff] %v1229_v44  ;;  %v1593_v36 = vpop.f32.mrb[4].mxu1 }
 0x28c   : > { %v1094_v51 = vadd.f32 %v1593_v36, %v2618_v63  ;;  %v1085_v18 = vpop.f32.mrb[5].mxu1 }
 0x28d   : > { %v1086_v31 = vadd.f32 %v2618_v63, %v1085_v18  ;;  %v1594_v54 = vpop.f32.mrb[6].mxu1 }
 0x28e   : > { %v1234_v30 = vadd.f32 %v1202_v50, %v1094_v51  ;;  %v1097_v42 = vadd.f32 %v1594_v54, %v2618_v63  ;;  %v1088_v15 = vpop.f32.mrb[7].mxu1  ;;  %v1213_v50 = vunpack.c.h.bf16 %v1829_v45 }
 0x28f   : > { %v1232_v14 = vadd.f32 %v1200_v19, %v1086_v31  ;;  %v1089_v10 = vadd.f32 %v2618_v63, %v1088_v15 }
 0x290   : > { %1266 = vst [vmem:[%s2628_s26 + $0x30] sm:$0xff] %v1234_v30  ;;  %v1235_v61 = vadd.f32 %v1203_v12, %v1097_v42  ;;  %v1831_v42 = vld [vmem:[%s2318_s15 + $0x50] sm:$0xff]  }
 0x291   : > { %1264 = vst [vmem:[%s2628_s26 + $0x20] sm:$0xff] %v1232_v14  ;;  %v1233_v40 = vadd.f32 %v1201_v57, %v1089_v10  ;;  %v1218_v57 = vunpack.c.l.bf16 %v1830_v28  ;;  %v1216_v15 = vunpack.c.l.bf16 %v1831_v42 }
 0x292   : > { %1267 = vst [vmem:[%s2628_s26 + $0x38] sm:$0xff] %v1235_v61  ;;  %v1219_v61 = vunpack.c.h.bf16 %v1830_v28 }
 0x293   : > { %1265 = vst [vmem:[%s2628_s26 + $0x28] sm:$0xff] %v1233_v40 }
 0x29a   : > { %v1597_v62 = vpop.f32.mrb[8].mxu1 }
 0x29b   : > { %v1110_v8 = vadd.f32 %v1597_v62, %v2618_v63  ;;  %v1101_v52 = vpop.f32.mrb[9].mxu1 }
 0x29c   : > { %v1102_v26 = vadd.f32 %v2618_v63, %v1101_v52  ;;  %v1598_v32 = vpop.f32.mrb[10].mxu1 }
 0x29d   : > { %v1238_v6 = vadd.f32 %v1206_v56, %v1110_v8  ;;  %v1113_v17 = vadd.f32 %v1598_v32, %v2618_v63  ;;  %v1104_v0 = vpop.f32.mrb[11].mxu1  ;;  %v1217_v56 = vunpack.c.h.bf16 %v1831_v42  ;;  %v1832_v32 = vld [vmem:[%s2318_s15 + $0x68] sm:$0xff]  }
 0x29e   : > { %v1236_v13 = vadd.f32 %v1204_v29, %v1102_v26  ;;  %v1105_v2 = vadd.f32 %v2618_v63, %v1104_v0 }
 0x29f   : > { %1270 = vst [vmem:[%s2628_s26 + $0x50] sm:$0xff] %v1238_v6  ;;  %v1239_v16 = vadd.f32 %v1207_v59, %v1113_v17  ;;  %v1833_v17 = vld [vmem:[%s2318_s15 + $0x60] sm:$0xff]  }
 0x2a0   : > { %1268 = vst [vmem:[%s2628_s26 + $0x40] sm:$0xff] %v1236_v13  ;;  %v1237_v55 = vadd.f32 %v1205_v5, %v1105_v2  ;;  %v1222_v5 = vunpack.c.l.bf16 %v1832_v32  ;;  %v1220_v0 = vunpack.c.l.bf16 %v1833_v17 }
 0x2a1   : > { %1271 = vst [vmem:[%s2628_s26 + $0x58] sm:$0xff] %v1239_v16  ;;  %v1223_v16 = vunpack.c.h.bf16 %v1832_v32 }
 0x2a2   : > { %1269 = vst [vmem:[%s2628_s26 + $0x48] sm:$0xff] %v1237_v55 }
 0x2a6   : > { %v1601_v1 = vpop.f32.mrb[12].mxu1 }
 0x2a7   : > { %v1126_v22 = vadd.f32 %v1601_v1, %v2618_v63  ;;  %v1117_v21 = vpop.f32.mrb[13].mxu1 }
 0x2a8   : > { %v1118_v38 = vadd.f32 %v2618_v63, %v1117_v21  ;;  %v1602_v24 = vpop.f32.mrb[14].mxu1 }
 0x2a9   : > { %v1242_v46 = vadd.f32 %v1210_v7, %v1126_v22  ;;  %v1129_v25 = vadd.f32 %v1602_v24, %v2618_v63  ;;  %v1120_v60 = vpop.f32.mrb[15].mxu1  ;;  %v1221_v7 = vunpack.c.h.bf16 %v1833_v17  ;;  %v1834_v24 = vld [vmem:[%s2318_s15 + $0x78] sm:$0xff]  }
 0x2aa   : > { %v1240_v33 = vadd.f32 %v1208_v34, %v1118_v38  ;;  %v1121_v35 = vadd.f32 %v2618_v63, %v1120_v60 }
 0x2ab   : > { %1274 = vst [vmem:[%s2628_s26 + $0x70] sm:$0xff] %v1242_v46  ;;  %v1243_v41 = vadd.f32 %v1211_v3, %v1129_v25  ;;  %v1835_v25 = vld [vmem:[%s2318_s15 + $0x70] sm:$0xff]  }
 0x2ac   : > { %1272 = vst [vmem:[%s2628_s26 + $0x60] sm:$0xff] %v1240_v33  ;;  %v1241_v39 = vadd.f32 %v1209_v48, %v1121_v35  ;;  %v1226_v48 = vunpack.c.l.bf16 %v1834_v24  ;;  %v1224_v60 = vunpack.c.l.bf16 %v1835_v25 }
 0x2ad   : > { %1275 = vst [vmem:[%s2628_s26 + $0x78] sm:$0xff] %v1243_v41  ;;  %v1227_v41 = vunpack.c.h.bf16 %v1834_v24 }
 0x2ae   : > { %1273 = vst [vmem:[%s2628_s26 + $0x68] sm:$0xff] %v1241_v39 }
 0x2b3   : > { %v1605_v43 = vpop.f32.mrb[16].mxu1 }
 0x2b4   : > { %v1142_v53 = vadd.f32 %v1605_v43, %v2618_v63  ;;  %v1133_v23 = vpop.f32.mrb[17].mxu1 }
 0x2b5   : > { %v1134_v9 = vadd.f32 %v2618_v63, %v1133_v23  ;;  %v1606_v44 = vpop.f32.mrb[18].mxu1 }
 0x2b6   : > { %v1246_v36 = vadd.f32 %v1214_v49, %v1142_v53  ;;  %v1145_v19 = vadd.f32 %v1606_v44, %v2618_v63  ;;  %v1136_v51 = vpop.f32.mrb[19].mxu1  ;;  %v1225_v49 = vunpack.c.h.bf16 %v1835_v25 }
 0x2b7   : > { %v1244_v18 = vadd.f32 %v1212_v27, %v1134_v9  ;;  %v1137_v12 = vadd.f32 %v2618_v63, %v1136_v51 }
 0x2b8   : > { %1278 = vst [vmem:[%s2628_s26 + $0x90] sm:$0xff] %v1246_v36  ;;  %v1247_v31 = vadd.f32 %v1215_v47, %v1145_v19 }
 0x2b9   : > { %1276 = vst [vmem:[%s2628_s26 + $0x80] sm:$0xff] %v1244_v18  ;;  %v1245_v54 = vadd.f32 %v1213_v50, %v1137_v12 }
 0x2ba   : > { %1279 = vst [vmem:[%s2628_s26 + $0x98] sm:$0xff] %v1247_v31 }
 0x2bb   : > { %1277 = vst [vmem:[%s2628_s26 + $0x88] sm:$0xff] %v1245_v54  ;;  %v1609_v30 = vpop.f32.mrb[20].mxu1 }
 0x2bc   : > { %v1158_v14 = vadd.f32 %v1609_v30, %v2618_v63  ;;  %v1149_v10 = vpop.f32.mrb[21].mxu1 }
 0x2bd   : > { %v1150_v40 = vadd.f32 %v2618_v63, %v1149_v10  ;;  %v1610_v11 = vpop.f32.mrb[22].mxu1 }
 0x2be   : > { %v1250_v62 = vadd.f32 %v1218_v57, %v1158_v14  ;;  %v1161_v4 = vadd.f32 %v1610_v11, %v2618_v63  ;;  %v1152_v29 = vpop.f32.mrb[23].mxu1 }
 0x2bf   : > { %v1248_v8 = vadd.f32 %v1216_v15, %v1150_v40  ;;  %v1153_v52 = vadd.f32 %v2618_v63, %v1152_v29 }
 0x2c0   : > { %1282 = vst [vmem:[%s2628_s26 + $0xb0] sm:$0xff] %v1250_v62  ;;  %v1251_v59 = vadd.f32 %v1219_v61, %v1161_v4 }
 0x2c1   : > { %1280 = vst [vmem:[%s2628_s26 + $0xa0] sm:$0xff] %v1248_v8  ;;  %v1249_v26 = vadd.f32 %v1217_v56, %v1153_v52 }
 0x2c2   : > { %1283 = vst [vmem:[%s2628_s26 + $0xb8] sm:$0xff] %v1251_v59 }
 0x2c3   : > { %1281 = vst [vmem:[%s2628_s26 + $0xa8] sm:$0xff] %v1249_v26  ;;  %v1613_v6 = vpop.f32.mrb[24].mxu1 }
 0x2c4   : > { %v1174_v13 = vadd.f32 %v1613_v6, %v2618_v63  ;;  %v1165_v2 = vpop.f32.mrb[25].mxu1 }
 0x2c5   : > { %v1166_v55 = vadd.f32 %v2618_v63, %v1165_v2  ;;  %v1614_v58 = vpop.f32.mrb[26].mxu1 }
 0x2c6   : > { %v1254_v1 = vadd.f32 %v1222_v5, %v1174_v13  ;;  %v1177_v20 = vadd.f32 %v1614_v58, %v2618_v63  ;;  %v1168_v34 = vpop.f32.mrb[27].mxu1 }
 0x2c7   : > { %v1252_v22 = vadd.f32 %v1220_v0, %v1166_v55  ;;  %v1169_v21 = vadd.f32 %v2618_v63, %v1168_v34 }
 0x2c8   : > { %1286 = vst [vmem:[%s2628_s26 + $0xd0] sm:$0xff] %v1254_v1  ;;  %v1255_v3 = vadd.f32 %v1223_v16, %v1177_v20 }
 0x2c9   : > { %1284 = vst [vmem:[%s2628_s26 + $0xc0] sm:$0xff] %v1252_v22  ;;  %v1253_v38 = vadd.f32 %v1221_v7, %v1169_v21 }
 0x2ca   : > { %1287 = vst [vmem:[%s2628_s26 + $0xd8] sm:$0xff] %v1255_v3 }
 0x2cb   : > { %1285 = vst [vmem:[%s2628_s26 + $0xc8] sm:$0xff] %v1253_v38  ;;  %v1617_v46 = vpop.f32.mrb[28].mxu1 }
 0x2cc   : > { %v1190_v33 = vadd.f32 %v1617_v46, %v2618_v63  ;;  %v1181_v35 = vpop.f32.mrb[29].mxu1 }
 0x2cd   : > { %v1182_v39 = vadd.f32 %v2618_v63, %v1181_v35  ;;  %v1618_v37 = vpop.f32.mrb[30].mxu1 }
 0x2ce   : > { %v1258_v43 = vadd.f32 %v1226_v48, %v1190_v33  ;;  %v1193_v45 = vadd.f32 %v1618_v37, %v2618_v63  ;;  %v1184_v27 = vpop.f32.mrb[31].mxu1 }
 0x2cf   : > { %v1256_v53 = vadd.f32 %v1224_v60, %v1182_v39  ;;  %v1185_v23 = vadd.f32 %v2618_v63, %v1184_v27 }
 0x2d0   : > { %1290 = vst [vmem:[%s2628_s26 + $0xf0] sm:$0xff] %v1258_v43  ;;  %v1259_v47 = vadd.f32 %v1227_v41, %v1193_v45 }
 0x2d1   : > { %1288 = vst [vmem:[%s2628_s26 + $0xe0] sm:$0xff] %v1256_v53  ;;  %v1257_v9 = vadd.f32 %v1225_v49, %v1185_v23 }
 0x2d2   : > { %1291 = vst [vmem:[%s2628_s26 + $0xf8] sm:$0xff] %v1259_v47 }
 0x2d3   : > { %1289 = vst [vmem:[%s2628_s26 + $0xe8] sm:$0xff] %v1257_v9 }
 0x2d4   : > { %1991 = shalt.err (!%p1988_p13)
}
 0x2d5   : > { %s1992_s12 = scalar_lea.hbm %s2708_s28, 4096  ;;  %s1996_s15 = scalar_lea.hbm %s2762_s5, 8192 }
 0x2d6   : > { %p1993_p9 = scmp.ne.s32.totalorder %s2708_s28, %s1992_s12  ;;  %p1997_p6 = scmp.lt.u32.totalorder %s2708_s28, %s2762_s5 }
 0x2d7   : > { %p1998_p4 = scmp.lt.u32.totalorder %s1996_s15, %s1992_s12  ;;  %p2000_p3 = scmp.lt.u32.totalorder %s1992_s12, %s2708_s28 }
 0x2d8   : > { %p1994_p0 = pnand %p1993_p9, %p2259_p10 }
 0x2d9   : > { %p1999_p8 = por %p1998_p4, %p1997_p6 }
 0x2da   : > { %p1995_p11 = pneg %p1994_p0 }
 0x2db   : > { %p2001_p5 = por %p2000_p3, %p1999_p8 }
 0x2dd   : > { %p2002_p7 = pnand %p2001_p5, %p1995_p11 }
 0x2df   : > { %2005 = shalt.err (!%p2002_p7)
}
 0x2e0   : > { %s2062_s23 = smov 128   ;;  %s2063_s16 = smov 8  }
 0x2e1   : > { %1637 = dma.vmem_to_hbm [thread:$0]  (%p2259_p10), %s2710_s27, 4096, %s2708_s28, %s1293_s22, %s2062_s23, %s2062_s23, %s2063_s16  }
 0x2e2 PF: > { %s1321_s6 = sand.u32 1, %s2040_s18   ;;  %p2780_p12 = scmp.ne.s32.totalorder %s2767_s25, 0 }
 0x2e3   : > { %p2781_p1 = scmp.ge.s32.totalorder %s2052_s21, 2  ;;  %s1322_s17 = scalar_lea.sflag [#allocation4], %s1321_s6 }
 0x2e5   : > { %p1657_p2 = pnand %p2781_p1, %p2780_p12 }
 0x2e7   : > { %2035 = dma.done.wait (!%p1657_p2), %s1322_s17, 4096  }
 0x2e8   : > { %2037 = vsyncadd (!%p1657_p2), %s1322_s17, 4294963200  ;;  %p20_p13 = scmp.ge.s32.totalorder %s2249_s14, 4   ;;  %s2782_s18 = smov %s2044_s19 }
 0x2e9   : > { %s2783_s19 = smov %s2048_s20  ;;  %s2784_s20 = smov %s2265_s10 }
 0x2ea   : > { %s2785_s21 = smov %s2249_s14  ;;  %22 = sbr.rel (!%p20_p13) target bundleno = 7 (0x7), region = 101 }
 0x2f1   :  { %1327 = vsyncpa [#allocation3], 1 }
 0x2f2   :  { %1329 = vsyncpa [#allocation3 + $0x1], 1 }
 0x2f3   :  { %1330 = vsyncpa [#allocation6], 1 }
 0x2f4   :  { %1331 = vsyncpa [#allocation9], 1 }
 0x2f5   :  { %1332 = vsyncpa [#allocation4], 1 }
 0x2f6   :  { %1334 = vsyncpa [#allocation4 + $0x1], 1 }

</bundles_post_ra>
